<compile_context>
chip_gen: v7x
topology: tpu7x:2x2x1
jax: 0.10.0
libtpu: 0.0.40
codegen_flags: <defaults>
</compile_context>

<pallas_src>
import functools
import math

import jax
import jax.numpy as jnp
from jax.experimental import pallas as pl
from jax.experimental.pallas import tpu as pltpu


def _round_up(v, m):
    return (v + m - 1) // m * m


def _pad2(a, rows, cols):
    return jnp.pad(a, ((0, rows - a.shape[0]), (0, cols - a.shape[1])))


def _vmem_capacity_bytes():
    """Best-effort per-core VMEM capacity; conservative (v7x = 64 MiB) fallback."""
    try:
        info = pltpu.get_tpu_info()
        for attr in ("vmem_capacity_bytes", "vmem_size_bytes", "vmem_bytes"):
            v = getattr(info, attr, None)
            if v:
                return int(v)
    except Exception:
        pass
    return 64 * 1024 * 1024


def _vmem_need_bytes(Np, Fp, Hp, Cp, tm, adj_resident):
    """Upper-bound VMEM footprint (assume default double-buffering everywhere)."""
    need = 3 * Np * Hp * 2                        # xa / xb / h0 activation scratch
    need += 2 * tm * Fp * 2                       # x0 row tile
    need += 2 * Fp * Hp * 2 + 2 * Hp * 4          # W_in + b_in
    need += 2 * 2 * (Hp * Hp * 2) * 2             # W1' + W2' per-layer blocks
    need += 2 * Hp * Cp * 2 + 2 * Cp * 4          # W_out + b_out
    need += 2 * tm * Cp * 4                       # output tile
    if adj_resident:
        need += 2 * Np * Np * 2                   # whole A_hat resident (bf16)
    else:
        need += 2 * tm * Np * 2                   # streamed (tm, Np) A_hat stripe
    return need


def _pick_tiling(N, F, H, C):
    """Generation-aware choice of (tm, Np, adjacency residency)."""
    Fp, Hp, Cp = (_round_up(v, 128) for v in (F, H, C))
    Np0 = _round_up(N, 128)
    cap = _vmem_capacity_bytes()
    budget = int(cap * 0.80)                      # leave headroom for the compiler

    cands = sorted({min(Np0, 1024)} | {t for t in (512, 256, 128) if t <= Np0},
                   reverse=True)
    # Prefer adjacency residency (removes the L x dominant HBM stream), then
    # the largest row tile that fits.
    for adj_resident in (True, False):
        for tm in cands:
            Np = _round_up(N, tm)
            if _vmem_need_bytes(Np, Fp, Hp, Cp, tm, adj_resident) <= budget:
                return tm, Np, Fp, Hp, Cp, adj_resident, cap
    tm = 128
    return tm, _round_up(N, tm), Fp, Hp, Cp, False, cap


# ------------------------- fused Pallas kernel -------------------------

def _gcnii_fused_kernel(x0_ref, win_ref, bin_ref, adj_ref, w1_ref, w2_ref,
                        wout_ref, bout_ref, o_ref,
                        xa_sc, xb_sc, h0_sc, *, tm, num_layers, adj_resident):
    p = pl.program_id(0)                       # phase: 0 | 1..L | L+1
    i = pl.program_id(1)                       # node-row tile
    start = pl.multiple_of(i * tm, tm)
    rows = pl.ds(start, tm)

    # ---- phase 0: input linear + ReLU -> scratch (x buffer A and h0) ----
    @pl.when(p == 0)
    def _input_proj():
        h = jnp.dot(x0_ref[...], win_ref[...],
                    preferred_element_type=jnp.float32)
        h = jnp.maximum(h + bin_ref[...], 0.0).astype(jnp.bfloat16)
        xa_sc[rows, :] = h
        h0_sc[rows, :] = h

    # ---- phases 1..L: GCNII conv layer (ping-pong between buffers A/B) ----
    def conv(x_in_sc, x_out_sc):
        # relu((A_hat[rows, :] @ x) @ W1' + h0[rows] @ W2')
        a_tile = adj_ref[rows, :] if adj_resident else adj_ref[...]
        agg = jnp.dot(a_tile, x_in_sc[...],
                      preferred_element_type=jnp.float32)
        out = jnp.dot(agg.astype(jnp.bfloat16), w1_ref[0],
                      preferred_element_type=jnp.float32)
        out = out + jnp.dot(h0_sc[rows, :], w2_ref[0],
                            preferred_element_type=jnp.float32)
        x_out_sc[rows, :] = jnp.maximum(out, 0.0).astype(jnp.bfloat16)

    is_conv = jnp.logical_and(p >= 1, p <= num_layers)
    layer_parity = (p - 1) % 2

    @pl.when(jnp.logical_and(is_conv, layer_parity == 0))
    def _conv_even():           # even layers read A, write B
        conv(xa_sc, xb_sc)

    @pl.when(jnp.logical_and(is_conv, layer_parity == 1))
    def _conv_odd():            # odd layers read B, write A
        conv(xb_sc, xa_sc)

    # ---- phase L+1: output linear (lane-dense (tm, Cp) store) ----
    @pl.when(p == num_layers + 1)
    def _output_proj():
        x_fin = xa_sc if num_layers % 2 == 0 else xb_sc    # static choice
        y = jnp.dot(x_fin[rows, :], wout_ref[...],
                    preferred_element_type=jnp.float32)
        o_ref[...] = (y + bout_ref[...]).astype(o_ref.dtype)


def gcnii_forward(params, x, adj, *, alpha, lamda):
    """Fused GCNII forward.  x: (N, F) f32, adj: (N, N) dense normalized A_hat."""
    N, F = x.shape
    H = params["w_in"].shape[1]
    C = params["w_out"].shape[1]
    L = len(params["convs"])

    tm, Np, Fp, Hp, Cp, adj_resident, vmem_cap = _pick_tiling(N, F, H, C)

    # Fold the residual scalars into the layer weights (host side, once).
    # Safe on the padded diagonal because padded hidden columns are exactly
    # zero throughout (zero-padded W_in columns / b_in, ReLU(0)=0).
    eye = jnp.eye(Hp, dtype=jnp.float32)
    w1s, w2s = [], []
    for l, (w1, w2) in enumerate(params["convs"]):
        beta = math.log(lamda / (l + 1) + 1.0)
        w1s.append(beta * _pad2(w1, Hp, Hp) + (1.0 - beta) * (1.0 - alpha) * eye)
        w2s.append(beta * _pad2(w2, Hp, Hp) + (1.0 - beta) * alpha * eye)
    w1_stack = jnp.stack(w1s).astype(jnp.bfloat16)           # (L, Hp, Hp)
    w2_stack = jnp.stack(w2s).astype(jnp.bfloat16)           # (L, Hp, Hp)

    # Lane-dense (multiple-of-128) padding; bf16 matmul operands.
    x0 = _pad2(x, Np, Fp).astype(jnp.bfloat16)
    adj_p = _pad2(adj, Np, Np).astype(jnp.bfloat16)
    w_in = _pad2(params["w_in"], Fp, Hp).astype(jnp.bfloat16)
    b_in = jnp.pad(params["b_in"], (0, Hp - H)).reshape(1, Hp).astype(jnp.float32)
    w_out = _pad2(params["w_out"], Hp, Cp).astype(jnp.bfloat16)
    b_out = jnp.pad(params["b_out"], (0, Cp - C)).reshape(1, Cp).astype(jnp.float32)

    n_tiles = Np // tm
    grid = (L + 2, n_tiles)                  # (phase, node-row tile)
    last_phase = L + 1

    # Phase-gated index maps: only DMA a block in the phases that use it.
    x0_idx = lambda p, i: (jnp.where(p == 0, i, 0), 0)
    w_idx = lambda p, i: (jnp.clip(p - 1, 0, L - 1), 0, 0)
    out_idx = lambda p, i: (jnp.where(p == last_phase, i, 0), 0)
    if adj_resident:
        # Whole A_hat resident in VMEM, loaded from HBM exactly once.
        adj_spec = pl.BlockSpec((Np, Np), lambda p, i: (0, 0))
    else:
        adj_spec = pl.BlockSpec(
            (tm, Np),
            lambda p, i: (jnp.where(jnp.logical_and(p >= 1, p <= L), i, 0), 0))

    flops = (2 * L * (Np * Np * Hp + 2 * Np * Hp * Hp)
             + 2 * Np * Fp * Hp + 2 * Np * Hp * Cp)
    adj_bytes = Np * Np * 2 * (1 if adj_resident else L)
    bytes_accessed = (adj_bytes
                      + Np * Fp * 2 + 2 * L * Hp * Hp * 2
                      + Fp * Hp * 2 + Hp * Cp * 2 + Np * Cp * 4)

    need = _vmem_need_bytes(Np, Fp, Hp, Cp, tm, adj_resident)
    vmem_limit = min(int(vmem_cap * 0.9), max(need + (8 << 20), 32 << 20))

    out = pl.pallas_call(
        functools.partial(_gcnii_fused_kernel, tm=tm, num_layers=L,
                          adj_resident=adj_resident),
        out_shape=jax.ShapeDtypeStruct((Np, Cp), jnp.float32),
        grid_spec=pltpu.PrefetchScalarGridSpec(
            num_scalar_prefetch=0,
            grid=grid,
            in_specs=[
                pl.BlockSpec((tm, Fp), x0_idx),               # x0 (phase 0 only)
                pl.BlockSpec((Fp, Hp), lambda p, i: (0, 0)),  # W_in (resident)
                pl.BlockSpec((1, Hp), lambda p, i: (0, 0)),   # b_in
                adj_spec,                                     # A_hat
                pl.BlockSpec((1, Hp, Hp), w_idx),             # folded W1' stack
                pl.BlockSpec((1, Hp, Hp), w_idx),             # folded W2' stack
                pl.BlockSpec((Hp, Cp), lambda p, i: (0, 0)),  # W_out (resident)
                pl.BlockSpec((1, Cp), lambda p, i: (0, 0)),   # b_out
            ],
            out_specs=pl.BlockSpec((tm, Cp), out_idx),        # written in last phase
            scratch_shapes=[pltpu.VMEM((Np, Hp), jnp.bfloat16),   # x buffer A
                            pltpu.VMEM((Np, Hp), jnp.bfloat16),   # x buffer B
                            pltpu.VMEM((Np, Hp), jnp.bfloat16)],  # h0
        ),
        compiler_params=pltpu.CompilerParams(
            # Both grid axes carry deps through the VMEM activation scratch
            # (layer l+1 reads every row tile layer l wrote) -> "arbitrary".
            dimension_semantics=("arbitrary", "arbitrary"),
            vmem_limit_bytes=vmem_limit),
        cost_estimate=pl.CostEstimate(flops=flops, transcendentals=0,
                                      bytes_accessed=bytes_accessed),
    )(x0, w_in, b_in, adj_p, w1_stack, w2_stack, w_out, b_out)

    return out[:N, :C]


# ------------------------- JAX glue -------------------------

def normalized_adjacency(edge_index, num_nodes):
    """Dense equivalent of PyG gcn_norm with added self-loops (undirected)."""
    src, dst = edge_index[0], edge_index[1]
    A = jnp.zeros((num_nodes, num_nodes), jnp.float32)
    A = A.at[dst, src].set(1.0)                    # message flows source -> target
    A = jnp.maximum(A, A.T)                        # symmetrize (undirected)
    A = A + jnp.eye(num_nodes, dtype=jnp.float32)  # add self-loops
    deg = A.sum(axis=1)
    dinv = jnp.where(deg > 0, 1.0 / jnp.sqrt(deg), 0.0)
    return dinv[:, None] * A * dinv[None, :]


def init_params(key, num_feats, dim_hidden, num_classes, num_layers):
    ks = jax.random.split(key, 2 * num_layers + 4)
    def glorot(k, fan_in, fan_out):
        lim = math.sqrt(6.0 / (fan_in + fan_out))
        return jax.random.uniform(k, (fan_in, fan_out), jnp.float32, -lim, lim)
    params = {
        "w_in": glorot(ks[0], num_feats, dim_hidden),
        "b_in": jnp.zeros((dim_hidden,), jnp.float32),
        "w_out": glorot(ks[1], dim_hidden, num_classes),
        "b_out": jnp.zeros((num_classes,), jnp.float32),
        "convs": [],
    }
    for i in range(num_layers):
        w1 = glorot(ks[2 + 2 * i], dim_hidden, dim_hidden)
        w2 = glorot(ks[3 + 2 * i], dim_hidden, dim_hidden)
        params["convs"].append((w1, w2))
    return params


def gcnii_reference(params, x, adj, *, alpha, lamda):
    """Pure-JAX f32 reference of the PyTorch forward (eval mode)."""
    x = jnp.maximum(x @ params["w_in"] + params["b_in"], 0.0)
    h0 = x
    for i, (w1, w2) in enumerate(params["convs"]):
        beta = math.log(lamda / (i + 1) + 1.0)
        support = (1.0 - beta) * (1.0 - alpha) * x + beta * (x @ w1)
        initial = (1.0 - beta) * alpha * h0 + beta * (h0 @ w2)
        x = jnp.maximum(adj @ support + initial, 0.0)
    return x @ params["w_out"] + params["b_out"]


# ------------------------- main -------------------------

if __name__ == "__main__":
    num_nodes = 256
    num_feats = 64
    dim_hidden = 64
    num_classes = 10
    num_layers = 4
    num_edges = 1024
    alpha = 0.1      # args.beta in the PyTorch module (passed as `alpha` to conv)
    lamda = 0.5

    key = jax.random.PRNGKey(0)
    k_feat, k_src, k_dst, k_par = jax.random.split(key, 4)

    x = jax.random.normal(k_feat, (num_nodes, num_feats), jnp.float32)
    src = jax.random.randint(k_src, (num_edges,), 0, num_nodes)
    dst = jax.random.randint(k_dst, (num_edges,), 0, num_nodes)
    dst = jnp.where(src == dst, (dst + 1) % num_nodes, dst)   # drop self-loops
    edge_index = jnp.stack([src, dst], axis=0)                # (2, E)

    adj = normalized_adjacency(edge_index, num_nodes)
    params = init_params(k_par, num_feats, dim_hidden, num_classes, num_layers)

    out = gcnii_forward(params, x, adj, alpha=alpha, lamda=lamda)
    out = jax.block_until_ready(out)

    ref = gcnii_reference(params, x, adj, alpha=alpha, lamda=lamda)
    rel_err = float(jnp.max(jnp.abs(out - ref)) / (jnp.max(jnp.abs(ref)) + 1e-6))

    assert out.shape == (num_nodes, num_classes)
    assert jnp.all(jnp.isfinite(out))
    assert rel_err < 0.1, f"rel_err={rel_err}"   # bf16 operands vs f32 reference
    print("KERNEL_OK")
</pallas_src>

<mosaic_0001>
module attributes {stable_mosaic.version = 11 : i64} {
  func.func @_gcnii_fused_kernel(%arg0: i32, %arg1: i32, %arg2: memref<256x128xbf16, #tpu.memory_space<vmem>>, %arg3: memref<128x128xbf16, #tpu.memory_space<vmem>>, %arg4: memref<1x128xf32, #tpu.memory_space<vmem>>, %arg5: memref<256x256xbf16, #tpu.memory_space<vmem>>, %arg6: memref<1x128x128xbf16, #tpu.memory_space<vmem>>, %arg7: memref<1x128x128xbf16, #tpu.memory_space<vmem>>, %arg8: memref<128x128xbf16, #tpu.memory_space<vmem>>, %arg9: memref<1x128xf32, #tpu.memory_space<vmem>>, %arg10: memref<256x128xf32, #tpu.memory_space<vmem>>, %arg11: memref<256x128xbf16, #tpu.memory_space<vmem>>, %arg12: memref<256x128xbf16, #tpu.memory_space<vmem>>, %arg13: memref<256x128xbf16, #tpu.memory_space<vmem>>) attributes {dimension_semantics = [#tpu.dimension_semantics<arbitrary>, #tpu.dimension_semantics<arbitrary>], iteration_bounds = array<i64: 6, 1>, scalar_prefetch = 0 : i64, scratch_operands = 3 : i64, tpu.core_type = #tpu.core_type<tc>, window_params = [{transform_indices = @transform_0, window_bounds = array<i64: 256, 128>}, {pipeline_mode = #tpu.pipeline_mode<synchronous>, transform_indices = @transform_1, window_bounds = array<i64: 128, 128>}, {pipeline_mode = #tpu.pipeline_mode<synchronous>, transform_indices = @transform_2, window_bounds = array<i64: 1, 128>}, {pipeline_mode = #tpu.pipeline_mode<synchronous>, transform_indices = @transform_3, window_bounds = array<i64: 256, 256>}, {transform_indices = @transform_4, window_bounds = array<i64: 1, 128, 128>}, {transform_indices = @transform_5, window_bounds = array<i64: 1, 128, 128>}, {pipeline_mode = #tpu.pipeline_mode<synchronous>, transform_indices = @transform_6, window_bounds = array<i64: 128, 128>}, {pipeline_mode = #tpu.pipeline_mode<synchronous>, transform_indices = @transform_7, window_bounds = array<i64: 1, 128>}, {transform_indices = @transform_8, window_bounds = array<i64: 256, 128>}]} {
    %c256_i32 = arith.constant 256 : i32
    %0 = arith.muli %arg1, %c256_i32 : i32
    %1 = tpu.assume_multiple %0, 256 : i32
    %c0_i32 = arith.constant 0 : i32
    %2 = arith.cmpi eq, %arg0, %c0_i32 : i32
    %3 = arith.extui %2 : i1 to i32
    %c0_i32_0 = arith.constant 0 : i32
    %4 = arith.cmpi ne, %3, %c0_i32_0 : i32
    scf.if %4 {
      %c0 = arith.constant 0 : index
      %c0_12 = arith.constant 0 : index
      %30 = vector.load %arg2[%c0, %c0_12] : memref<256x128xbf16, #tpu.memory_space<vmem>>, vector<256x128xbf16>
      %c0_13 = arith.constant 0 : index
      %c0_14 = arith.constant 0 : index
      %31 = vector.load %arg3[%c0_13, %c0_14] : memref<128x128xbf16, #tpu.memory_space<vmem>>, vector<128x128xbf16>
      %cst = arith.constant dense<0.000000e+00> : vector<256x128xf32>
      %32 = tpu.matmul %30, %31, %cst {dimension_numbers = #tpu.dot_dimension_numbers<[1], [0], [0], [1], [0, 0, 1, 1], [], []>} : vector<256x128xbf16>, vector<128x128xbf16>, vector<256x128xf32> -> vector<256x128xf32>
      %c0_15 = arith.constant 0 : index
      %c0_16 = arith.constant 0 : index
      %33 = vector.load %arg4[%c0_15, %c0_16] : memref<1x128xf32, #tpu.memory_space<vmem>>, vector<1x128xf32>
      %34 = vector.broadcast %33 : vector<1x128xf32> to vector<256x128xf32>
      %35 = arith.addf %32, %34 : vector<256x128xf32>
      %cst_17 = arith.constant 0.000000e+00 : f32
      %36 = vector.broadcast %cst_17 : f32 to vector<256x128xf32>
      %37 = arith.maximumf %35, %36 : vector<256x128xf32>
      %38 = arith.truncf %37 : vector<256x128xf32> to vector<256x128xbf16>
      %39 = arith.index_cast %1 : i32 to index
      %c0_18 = arith.constant 0 : index
      %40 = vector.load %arg11[%39, %c0_18] : memref<256x128xbf16, #tpu.memory_space<vmem>>, vector<256x128xbf16>
      tpu.vector_store %arg11[%39, %c0_18], %38 {strides = array<i32>} : memref<256x128xbf16, #tpu.memory_space<vmem>>, vector<256x128xbf16>,
      %41 = arith.index_cast %1 : i32 to index
      %c0_19 = arith.constant 0 : index
      %42 = vector.load %arg13[%41, %c0_19] : memref<256x128xbf16, #tpu.memory_space<vmem>>, vector<256x128xbf16>
      tpu.vector_store %arg13[%41, %c0_19], %38 {strides = array<i32>} : memref<256x128xbf16, #tpu.memory_space<vmem>>, vector<256x128xbf16>,
    } else {
    }
    %c1_i32 = arith.constant 1 : i32
    %5 = arith.cmpi sge, %arg0, %c1_i32 : i32
    %c4_i32 = arith.constant 4 : i32
    %6 = arith.cmpi sle, %arg0, %c4_i32 : i32
    %7 = arith.andi %5, %6 : i1
    %c1_i32_1 = arith.constant 1 : i32
    %8 = arith.subi %arg0, %c1_i32_1 : i32
    %c2_i32 = arith.constant 2 : i32
    %c0_i32_2 = arith.constant 0 : i32
    %9 = arith.cmpi eq, %c2_i32, %c0_i32_2 : i32
    %c1_i32_3 = arith.constant 1 : i32
    %10 = arith.select %9, %c1_i32_3, %c2_i32 : i32
    %11 = arith.remsi %8, %10 : i32
    %c0_i32_4 = arith.constant 0 : i32
    %12 = arith.cmpi ne, %11, %c0_i32_4 : i32
    %c0_i32_5 = arith.constant 0 : i32
    %13 = arith.cmpi slt, %11, %c0_i32_5 : i32
    %c0_i32_6 = arith.constant 0 : i32
    %14 = arith.cmpi slt, %10, %c0_i32_6 : i32
    %15 = arith.xori %13, %14 : i1
    %16 = arith.andi %15, %12 : i1
    %17 = arith.addi %11, %10 : i32
    %18 = arith.select %16, %17, %11 : i32
    %c0_i32_7 = arith.constant 0 : i32
    %19 = arith.cmpi eq, %18, %c0_i32_7 : i32
    %20 = arith.andi %7, %19 : i1
    %21 = arith.extui %20 : i1 to i32
    %c0_i32_8 = arith.constant 0 : i32
    %22 = arith.cmpi ne, %21, %c0_i32_8 : i32
    scf.if %22 {
      %30 = arith.index_cast %1 : i32 to index
      %c0 = arith.constant 0 : index
      %31 = vector.load %arg5[%30, %c0] : memref<256x256xbf16, #tpu.memory_space<vmem>>, vector<256x256xbf16>
      %c0_12 = arith.constant 0 : index
      %c0_13 = arith.constant 0 : index
      %32 = vector.load %arg11[%c0_12, %c0_13] : memref<256x128xbf16, #tpu.memory_space<vmem>>, vector<256x128xbf16>
      %cst = arith.constant dense<0.000000e+00> : vector<256x128xf32>
      %33 = tpu.matmul %31, %32, %cst {dimension_numbers = #tpu.dot_dimension_numbers<[1], [0], [0], [1], [0, 0, 1, 1], [], []>} : vector<256x256xbf16>, vector<256x128xbf16>, vector<256x128xf32> -> vector<256x128xf32>
      %34 = arith.truncf %33 : vector<256x128xf32> to vector<256x128xbf16>
      %c0_14 = arith.constant 0 : index
      %c0_15 = arith.constant 0 : index
      %c0_16 = arith.constant 0 : index
      %35 = vector.load %arg6[%c0_14, %c0_15, %c0_16] : memref<1x128x128xbf16, #tpu.memory_space<vmem>>, vector<1x128x128xbf16>
      %36 = vector.shape_cast %35 : vector<1x128x128xbf16> to vector<128x128xbf16>
      %cst_17 = arith.constant dense<0.000000e+00> : vector<256x128xf32>
      %37 = tpu.matmul %34, %36, %cst_17 {dimension_numbers = #tpu.dot_dimension_numbers<[1], [0], [0], [1], [0, 0, 1, 1], [], []>} : vector<256x128xbf16>, vector<128x128xbf16>, vector<256x128xf32> -> vector<256x128xf32>
      %38 = arith.index_cast %1 : i32 to index
      %c0_18 = arith.constant 0 : index
      %39 = vector.load %arg13[%38, %c0_18] : memref<256x128xbf16, #tpu.memory_space<vmem>>, vector<256x128xbf16>
      %c0_19 = arith.constant 0 : index
      %c0_20 = arith.constant 0 : index
      %c0_21 = arith.constant 0 : index
      %40 = vector.load %arg7[%c0_19, %c0_20, %c0_21] : memref<1x128x128xbf16, #tpu.memory_space<vmem>>, vector<1x128x128xbf16>
      %41 = vector.shape_cast %40 : vector<1x128x128xbf16> to vector<128x128xbf16>
      %cst_22 = arith.constant dense<0.000000e+00> : vector<256x128xf32>
      %42 = tpu.matmul %39, %41, %cst_22 {dimension_numbers = #tpu.dot_dimension_numbers<[1], [0], [0], [1], [0, 0, 1, 1], [], []>} : vector<256x128xbf16>, vector<128x128xbf16>, vector<256x128xf32> -> vector<256x128xf32>
      %43 = arith.addf %37, %42 : vector<256x128xf32>
      %cst_23 = arith.constant 0.000000e+00 : f32
      %44 = vector.broadcast %cst_23 : f32 to vector<256x128xf32>
      %45 = arith.maximumf %43, %44 : vector<256x128xf32>
      %46 = arith.truncf %45 : vector<256x128xf32> to vector<256x128xbf16>
      %47 = arith.index_cast %1 : i32 to index
      %c0_24 = arith.constant 0 : index
      %48 = vector.load %arg12[%47, %c0_24] : memref<256x128xbf16, #tpu.memory_space<vmem>>, vector<256x128xbf16>
      tpu.vector_store %arg12[%47, %c0_24], %46 {strides = array<i32>} : memref<256x128xbf16, #tpu.memory_space<vmem>>, vector<256x128xbf16>,
    } else {
    }
    %c1_i32_9 = arith.constant 1 : i32
    %23 = arith.cmpi eq, %18, %c1_i32_9 : i32
    %24 = arith.andi %7, %23 : i1
    %25 = arith.extui %24 : i1 to i32
    %c0_i32_10 = arith.constant 0 : i32
    %26 = arith.cmpi ne, %25, %c0_i32_10 : i32
    scf.if %26 {
      %30 = arith.index_cast %1 : i32 to index
      %c0 = arith.constant 0 : index
      %31 = vector.load %arg5[%30, %c0] : memref<256x256xbf16, #tpu.memory_space<vmem>>, vector<256x256xbf16>
      %c0_12 = arith.constant 0 : index
      %c0_13 = arith.constant 0 : index
      %32 = vector.load %arg12[%c0_12, %c0_13] : memref<256x128xbf16, #tpu.memory_space<vmem>>, vector<256x128xbf16>
      %cst = arith.constant dense<0.000000e+00> : vector<256x128xf32>
      %33 = tpu.matmul %31, %32, %cst {dimension_numbers = #tpu.dot_dimension_numbers<[1], [0], [0], [1], [0, 0, 1, 1], [], []>} : vector<256x256xbf16>, vector<256x128xbf16>, vector<256x128xf32> -> vector<256x128xf32>
      %34 = arith.truncf %33 : vector<256x128xf32> to vector<256x128xbf16>
      %c0_14 = arith.constant 0 : index
      %c0_15 = arith.constant 0 : index
      %c0_16 = arith.constant 0 : index
      %35 = vector.load %arg6[%c0_14, %c0_15, %c0_16] : memref<1x128x128xbf16, #tpu.memory_space<vmem>>, vector<1x128x128xbf16>
      %36 = vector.shape_cast %35 : vector<1x128x128xbf16> to vector<128x128xbf16>
      %cst_17 = arith.constant dense<0.000000e+00> : vector<256x128xf32>
      %37 = tpu.matmul %34, %36, %cst_17 {dimension_numbers = #tpu.dot_dimension_numbers<[1], [0], [0], [1], [0, 0, 1, 1], [], []>} : vector<256x128xbf16>, vector<128x128xbf16>, vector<256x128xf32> -> vector<256x128xf32>
      %38 = arith.index_cast %1 : i32 to index
      %c0_18 = arith.constant 0 : index
      %39 = vector.load %arg13[%38, %c0_18] : memref<256x128xbf16, #tpu.memory_space<vmem>>, vector<256x128xbf16>
      %c0_19 = arith.constant 0 : index
      %c0_20 = arith.constant 0 : index
      %c0_21 = arith.constant 0 : index
      %40 = vector.load %arg7[%c0_19, %c0_20, %c0_21] : memref<1x128x128xbf16, #tpu.memory_space<vmem>>, vector<1x128x128xbf16>
      %41 = vector.shape_cast %40 : vector<1x128x128xbf16> to vector<128x128xbf16>
      %cst_22 = arith.constant dense<0.000000e+00> : vector<256x128xf32>
      %42 = tpu.matmul %39, %41, %cst_22 {dimension_numbers = #tpu.dot_dimension_numbers<[1], [0], [0], [1], [0, 0, 1, 1], [], []>} : vector<256x128xbf16>, vector<128x128xbf16>, vector<256x128xf32> -> vector<256x128xf32>
      %43 = arith.addf %37, %42 : vector<256x128xf32>
      %cst_23 = arith.constant 0.000000e+00 : f32
      %44 = vector.broadcast %cst_23 : f32 to vector<256x128xf32>
      %45 = arith.maximumf %43, %44 : vector<256x128xf32>
      %46 = arith.truncf %45 : vector<256x128xf32> to vector<256x128xbf16>
      %47 = arith.index_cast %1 : i32 to index
      %c0_24 = arith.constant 0 : index
      %48 = vector.load %arg11[%47, %c0_24] : memref<256x128xbf16, #tpu.memory_space<vmem>>, vector<256x128xbf16>
      tpu.vector_store %arg11[%47, %c0_24], %46 {strides = array<i32>} : memref<256x128xbf16, #tpu.memory_space<vmem>>, vector<256x128xbf16>,
    } else {
    }
    %c5_i32 = arith.constant 5 : i32
    %27 = arith.cmpi eq, %arg0, %c5_i32 : i32
    %28 = arith.extui %27 : i1 to i32
    %c0_i32_11 = arith.constant 0 : i32
    %29 = arith.cmpi ne, %28, %c0_i32_11 : i32
    scf.if %29 {
      %30 = arith.index_cast %1 : i32 to index
      %c0 = arith.constant 0 : index
      %31 = vector.load %arg11[%30, %c0] : memref<256x128xbf16, #tpu.memory_space<vmem>>, vector<256x128xbf16>
      %c0_12 = arith.constant 0 : index
      %c0_13 = arith.constant 0 : index
      %32 = vector.load %arg8[%c0_12, %c0_13] : memref<128x128xbf16, #tpu.memory_space<vmem>>, vector<128x128xbf16>
      %cst = arith.constant dense<0.000000e+00> : vector<256x128xf32>
      %33 = tpu.matmul %31, %32, %cst {dimension_numbers = #tpu.dot_dimension_numbers<[1], [0], [0], [1], [0, 0, 1, 1], [], []>} : vector<256x128xbf16>, vector<128x128xbf16>, vector<256x128xf32> -> vector<256x128xf32>
      %c0_14 = arith.constant 0 : index
      %c0_15 = arith.constant 0 : index
      %34 = vector.load %arg9[%c0_14, %c0_15] : memref<1x128xf32, #tpu.memory_space<vmem>>, vector<1x128xf32>
      %35 = vector.broadcast %34 : vector<1x128xf32> to vector<256x128xf32>
      %36 = arith.addf %33, %35 : vector<256x128xf32>
      %c0_16 = arith.constant 0 : index
      %c0_17 = arith.constant 0 : index
      %37 = vector.load %arg10[%c0_16, %c0_17] : memref<256x128xf32, #tpu.memory_space<vmem>>, vector<256x128xf32>
      tpu.vector_store %arg10[%c0_16, %c0_17], %36 {strides = array<i32>} : memref<256x128xf32, #tpu.memory_space<vmem>>, vector<256x128xf32>,
    } else {
    }
    return
  }
  func.func @transform_0(%arg0: i32, %arg1: i32) -> (i32, i32) {
    %c0_i32 = arith.constant 0 : i32
    %0 = arith.cmpi eq, %arg0, %c0_i32 : i32
    %c0_i32_0 = arith.constant 0 : i32
    %1 = arith.select %0, %arg1, %c0_i32_0 : i32
    %c0_i32_1 = arith.constant 0 : i32
    %c0_i32_2 = arith.constant 0 : i32
    return %1, %c0_i32_1 : i32, i32
  }
  func.func @transform_1(%arg0: i32, %arg1: i32) -> (i32, i32) {
    %c0_i32 = arith.constant 0 : i32
    %c0_i32_0 = arith.constant 0 : i32
    %c0_i32_1 = arith.constant 0 : i32
    return %c0_i32, %c0_i32_0 : i32, i32
  }
  func.func @transform_2(%arg0: i32, %arg1: i32) -> (i32, i32) {
    %c0_i32 = arith.constant 0 : i32
    %c0_i32_0 = arith.constant 0 : i32
    %c0_i32_1 = arith.constant 0 : i32
    return %c0_i32, %c0_i32_0 : i32, i32
  }
  func.func @transform_3(%arg0: i32, %arg1: i32) -> (i32, i32) {
    %c0_i32 = arith.constant 0 : i32
    %c0_i32_0 = arith.constant 0 : i32
    %c0_i32_1 = arith.constant 0 : i32
    return %c0_i32, %c0_i32_0 : i32, i32
  }
  func.func @transform_4(%arg0: i32, %arg1: i32) -> (i32, i32, i32) {
    %c1_i32 = arith.constant 1 : i32
    %0 = arith.subi %arg0, %c1_i32 : i32
    %c0_i32 = arith.constant 0 : i32
    %c3_i32 = arith.constant 3 : i32
    %1 = arith.maxsi %c0_i32, %0 : i32
    %2 = arith.minsi %c3_i32, %1 : i32
    %c0_i32_0 = arith.constant 0 : i32
    %c0_i32_1 = arith.constant 0 : i32
    %c0_i32_2 = arith.constant 0 : i32
    return %2, %c0_i32_0, %c0_i32_1 : i32, i32, i32
  }
  func.func @transform_5(%arg0: i32, %arg1: i32) -> (i32, i32, i32) {
    %c1_i32 = arith.constant 1 : i32
    %0 = arith.subi %arg0, %c1_i32 : i32
    %c0_i32 = arith.constant 0 : i32
    %c3_i32 = arith.constant 3 : i32
    %1 = arith.maxsi %c0_i32, %0 : i32
    %2 = arith.minsi %c3_i32, %1 : i32
    %c0_i32_0 = arith.constant 0 : i32
    %c0_i32_1 = arith.constant 0 : i32
    %c0_i32_2 = arith.constant 0 : i32
    return %2, %c0_i32_0, %c0_i32_1 : i32, i32, i32
  }
  func.func @transform_6(%arg0: i32, %arg1: i32) -> (i32, i32) {
    %c0_i32 = arith.constant 0 : i32
    %c0_i32_0 = arith.constant 0 : i32
    %c0_i32_1 = arith.constant 0 : i32
    return %c0_i32, %c0_i32_0 : i32, i32
  }
  func.func @transform_7(%arg0: i32, %arg1: i32) -> (i32, i32) {
    %c0_i32 = arith.constant 0 : i32
    %c0_i32_0 = arith.constant 0 : i32
    %c0_i32_1 = arith.constant 0 : i32
    return %c0_i32, %c0_i32_0 : i32, i32
  }
  func.func @transform_8(%arg0: i32, %arg1: i32) -> (i32, i32) {
    %c5_i32 = arith.constant 5 : i32
    %0 = arith.cmpi eq, %arg0, %c5_i32 : i32
    %c0_i32 = arith.constant 0 : i32
    %1 = arith.select %0, %arg1, %c0_i32 : i32
    %c0_i32_0 = arith.constant 0 : i32
    %c0_i32_1 = arith.constant 0 : i32
    return %1, %c0_i32_0 : i32, i32
  }
}

</mosaic_0001>

<bundles_post_ra>
// kernel: tpu_custom_call.1
= control target key start
LH: loop header
LB: loop body
LE: loop exit
PB: predicated region body
PF: predicated region fallthrough
CT: control target
= control target key end

     0   :  { %s5336_s0 = inlined_call_operand.hbm [shape: bf16[256,128], index: 0, kind: input, shape index: {}]   ;;  %s5337_s1 = inlined_call_operand.hbm [shape: bf16[128,128], index: 1, kind: input, shape index: {}]   ;;  %s5338_s2 = inlined_call_operand.vmem [shape: f32[1,128], index: 2, kind: input, shape index: {}]   ;;  %s5339_s3 = inlined_call_operand.hbm [shape: bf16[256,256], index: 3, kind: input, shape index: {}]   ;;  %s5340_s4 = inlined_call_operand.hbm [shape: bf16[4,128,128], index: 4, kind: input, shape index: {}]   ;;  %s5341_s5 = inlined_call_operand.hbm [shape: bf16[4,128,128], index: 5, kind: input, shape index: {}]   ;;  %s5342_s6 = inlined_call_operand.hbm [shape: bf16[128,128], index: 6, kind: input, shape index: {}]   ;;  %s5343_s7 = inlined_call_operand.vmem [shape: f32[1,128], index: 7, kind: input, shape index: {}]   ;;  %s5344_s8 = inlined_call_operand.hbm [shape: f32[256,128], index: 8, kind: output, shape index: {}]  }
   0x1   :  { %5364 = sst [smem:[#allocation27_spill]] %s5337_s1 }
   0x2   :  { %5365 = sst [smem:[#allocation28_spill]] %s5338_s2 }
   0x3   :  { %5366 = sst [smem:[#allocation29_spill]] %s5340_s4 }
   0x4   :  { %5367 = sst [smem:[#allocation30_spill]] %s5343_s7 }
   0x5   :  { %5368 = sst [smem:[#allocation31_spill]] %s5344_s8 }
   0x6   :  { %13 = vsyncpa [#allocation6], 0 }
   0x7   :  { %15 = vsyncpa [#allocation6 + $0x1], 0 }
   0x8   :  { %16 = vsyncpa [#allocation9], 0 }
   0x9   :  { %17 = vsyncpa [#allocation12], 0 }
   0xa   :  { %19 = vsyncpa [#allocation12 + $0x1], 0 }
   0xb   :  { %20 = vsyncpa [#allocation15], 0 }
   0xc   :  { %21 = vsyncpa [#allocation7], 0 }
   0xd   :  { %23 = vsyncpa [#allocation7 + $0x1], 0  ;;  %s4885_s27 = smov 0   ;;  %s4887_s28 = smov 0  }
   0xe   :  { %s4889_s29 = smov 0   ;;  %s4891_s30 = smov 0  }
   0xf   :  { %s4893_s9 = smov 0   ;;  %s4895_s10 = smov 0  }
  0x10 LB: > { %5369 = sst [smem:[#allocation22_spill]] %s4813_s29  ;;  %s4914_s11 = sadd.s32 4294967295, %s4825_s10   ;;  %s4825_s10 = sphi %s4895_s10, %s29_s10   ;;  %s4821_s9 = sphi %s4893_s9, %s5410_s9   ;;  %s4817_s30 = sphi %s4891_s30, %s5413_s30   ;;  %s4813_s29 = sphi %s4889_s29, %s5408_s29   ;;  %s4809_s28 = sphi %s4887_s28, %s5412_s28   ;;  %s4805_s27 = sphi %s4885_s27, %s5411_s27  }
  0x11   : > { %5370 = sst [smem:[#allocation23_spill]] %s4817_s30  ;;  %p164_p0 = scmp.ne.s32.totalorder %s4809_s28, %s4805_s27 }
  0x12   : > { %5371 = sst [smem:[#allocation24_spill]] %s4821_s9  ;;  %p5345_p1 = scmp.eq.s32.totalorder %s4914_s11, 0 }
  0x13   : > { %p3345_p2 = scmp.ge.s32.totalorder %s4825_s10, 1  ;;  %p283_p3 = scmp.lt.s32.totalorder %s4825_s10, 7 }
  0x14   : > { %p4923_p4 = por %p5345_p1, %p164_p0  ;;  %s4827_s15 = smov [#allocation8]  }
  0x15   : > { %p4927_p5 = pnand %p3345_p2, %p283_p3  ;;  %s295_s16 = sshll.u32 %s4827_s15, 4  ;;  %s296_s16 = int_to_ptr.vmem [resolvable:$true] %s295_s16 }
  0x16   : > { %s5372_s13 = scalar_select %p4923_p4, 1, 0 }
  0x17   : > { %s5373_s14 = scalar_select %p4927_p5, 1, 0 }
  0x18   : > { %p4306_p6 = pneg %p4927_p5  ;;  %s5375_s1 = sld [smem:[#allocation27_spill]] }
  0x1a   : > { %p4935_p7 = pnand %p4306_p6, %p5345_p1 }
  0x1c   : > { %s5374_s17 = scalar_select %p4935_p7, 1, 0 }
  0x1d   : > { %p4947_p9 = pneg %p4935_p7 }
  0x1e   : > { %s4561_s20 = scalar_lea.hbm %s5375_s1, 1024 }
  0x1f   : > { %p4562_p8 = scmp.ne.s32.totalorder %s5375_s1, %s4561_s20  ;;  %p4568_p12 = scmp.lt.u32.totalorder %s4561_s20, %s5375_s1 }
  0x21   : > { %p4564_p10 = pnand %p4947_p9, %p4562_p8 }
  0x23   : > { %p4565_p11 = pneg %p4564_p10 }
  0x25   : > { %p4570_p13 = pnand %p4568_p12, %p4565_p11 }
  0x27   : > { %4573 = shalt.err (!%p4570_p13)
}
  0x28   : > { %s4574_s26 = scalar_lea.vmem %s296_s16, 1024  ;;  %p4582_p6 = scmp.lt.s32.totalorder %s296_s16, %s296_s16 }
  0x29   : > { %p4575_p0 = scmp.ne.s32.totalorder %s296_s16, %s4574_s26  ;;  %p4583_p1 = scmp.lt.s32.totalorder %s4574_s26, %s4574_s26 }
  0x2b   : > { %p4577_p2 = pnand %p4575_p0, %p4947_p9  ;;  %p4584_p4 = por %p4583_p1, %p4582_p6 }
  0x2d   : > { %p4578_p3 = pneg %p4577_p2 }
  0x2f   : > { %p4585_p5 = pnand %p4584_p4, %p4578_p3 }
  0x31   : > { %4588 = shalt.err (!%p4585_p5)
}
  0x32   : > { %s5348_s27 = smov 64   ;;  %s5350_s15 = smov 4  }
  0x33   : > { %4309 = dma.hbm_to_vmem [thread:$0]  (!%p4935_p7), %s5375_s1, 1024, %s296_s16, [#allocation9], %s5348_s27, %s5348_s27, %s5350_s15  }
  0x34   : > { %s41_s20 = sadd.s32 1, %s4821_s9  ;;  %s3321_s21 = sadd.s32 4294967295, %s4821_s9 }
  0x35   : > { %p43_p1 = scmp.ge.s32.totalorder %s41_s20, 6  ;;  %p139_p4 = scmp.gt.s32.totalorder %s3321_s21, 0 }
  0x36   : > { %p3322_p5 = scmp.lt.s32.totalorder %s3321_s21, 3  ;;  %s151_s24 = sadd.s32 1, %s4813_s29 }
  0x37   : > { %s5415_s20 = smov (%p43_p1, %s41_s20), 0  ;;  %s5417_s21 = smov (!%p139_p4, %s3321_s21), 0 }
  0x38   : > { %5377 = sst [smem:[#allocation25_spill]] %s5415_s20  ;;  %s3327_s22 = sadd.s32 4294967295, %s5415_s20 }
  0x39   : > { %s5419_s21 = smov (!%p3322_p5, %s5417_s21), 3  ;;  %p144_p8 = scmp.gt.s32.totalorder %s3327_s22, 0 }
  0x3a   : > { %p3328_p10 = scmp.lt.s32.totalorder %s3327_s22, 3  ;;  %p158_p11 = scmp.ne.s32.totalorder %s4813_s29, %s4809_s28 }
  0x3b   : > { %p5356_p12 = scmp.eq.s32.totalorder %s4825_s10, 0  ;;  %s5421_s22 = smov (!%p144_p8, %s3327_s22), 0 }
  0x3c   : > { %p5355_p0 = scmp.lt.s32.totalorder %s4825_s10, 6  ;;  %s5423_s22 = smov (!%p3328_p10, %s5421_s22), 3 }
  0x3d   : > { %p4977_p13 = por %p5356_p12, %p158_p11  ;;  %s364_s25 = sand.u32 1, %s4825_s10  }
  0x3e   : > { %s366_s26 = sand.u32 1, %s4813_s29   ;;  %s148_s18 = ssub.s32 %s5419_s21, %s5423_s22 }
  0x3f   : > { %p149_p2 = scmp.eq.s32.totalorder %s148_s18, 0  ;;  %s4984_s19 = sshll.u32 %s366_s26, 6 }
  0x40   : > { %s3526_s12 = sshll.u32 %s5419_s21, 10  ;;  %s5380_s4 = sld [smem:[#allocation29_spill]] }
  0x41   : > { %s4987_s27 = scalar_select %p149_p2, %s4813_s29, %s151_s24  }
  0x42   : > { %s368_s9 = scalar_lea.vmem [#allocation11], %s4984_s19  ;;  %p5001_p3 = pnand %p5355_p0, %p4977_p13 }
  0x43   : > { %5379 = sst [smem:[#allocation26_spill]] %s4987_s27  ;;  %s380_s8 = sshll.u32 %s368_s9, 4  ;;  %s4995_s8 = int_to_ptr.vmem [resolvable:$true] %s380_s8 }
  0x44   : > { %s5381_s22 = scalar_select %p5001_p3, 1, 0 }
  0x45   : > { %s5008_s1 = scalar_lea.hbm %s5341_s5, %s3526_s12  ;;  %s5010_s15 = scalar_lea.sflag [#allocation12], %s364_s25 }
  0x46   : > { %s4992_s20 = scalar_lea.hbm %s5380_s4, %s3526_s12  ;;  %p5360_p1 = pneg %p5001_p3 }
  0x47   : > { %s4589_s26 = scalar_lea.hbm %s4992_s20, 1024  ;;  %s4594_s18 = scalar_lea.hbm %s5380_s4, 4096 }
  0x48   : > { %p4590_p6 = scmp.ne.s32.totalorder %s4992_s20, %s4589_s26  ;;  %p4595_p8 = scmp.lt.u32.totalorder %s4992_s20, %s5380_s4 }
  0x49   : > { %p4596_p10 = scmp.lt.u32.totalorder %s4594_s18, %s4589_s26  ;;  %p4598_p13 = scmp.lt.u32.totalorder %s4589_s26, %s4992_s20 }
  0x4a   : > { %p4592_p4 = pnand %p5360_p1, %p4590_p6 }
  0x4b   : > { %p4597_p11 = por %p4596_p10, %p4595_p8 }
  0x4c   : > { %p4593_p5 = pneg %p4592_p4 }
  0x4d   : > { %p4599_p2 = por %p4598_p13, %p4597_p11 }
  0x4f   : > { %p4600_p0 = pnand %p4599_p2, %p4593_p5 }
  0x51   : > { %4603 = shalt.err (!%p4600_p0)
}
  0x52   : > { %s4604_s12 = scalar_lea.vmem %s4995_s8, 1024  ;;  %s4830_s25 = smov [#allocation11]  }
  0x53   : > { %p4605_p6 = scmp.ne.s32.totalorder %s4995_s8, %s4604_s12  ;;  %s4609_s24 = sshll.u32 %s4830_s25, 4  ;;  %s4610_s24 = int_to_ptr.vmem [resolvable:$false] %s4609_s24 }
  0x54   : > { %s4611_s27 = scalar_lea.vmem %s4610_s24, 2048  ;;  %p4612_p7 = scmp.lt.s32.totalorder %s4995_s8, %s4610_s24 }
  0x55   : > { %p4607_p4 = pnand %p4605_p6, %p5360_p1  ;;  %p4613_p8 = scmp.lt.s32.totalorder %s4611_s27, %s4604_s12 }
  0x57   : > { %p4608_p12 = pneg %p4607_p4  ;;  %p4614_p10 = por %p4613_p8, %p4612_p7 }
  0x59   : > { %p4615_p11 = pnand %p4614_p10, %p4608_p12 }
  0x5b   : > { %4618 = shalt.err (!%p4615_p11)
}
  0x5c   : > { %s5382_s26 = smov 4   ;;  %s5383_s9 = smov 64  }
  0x5d   : > { %4322 = dma.hbm_to_vmem [thread:$0]  (!%p5001_p3), %s4992_s20, 1024, %s4995_s8, %s5010_s15, %s5383_s9, %s5383_s9, %s5382_s26  }
  0x5e   : > { %s394_s16 = scalar_lea.vmem [#allocation13], %s4984_s19  ;;  %s4831_s21 = smov [#allocation10]  }
  0x5f   : > { %s406_s18 = sshll.u32 %s394_s16, 4  ;;  %s311_s25 = sshll.u32 %s4831_s21, 4  ;;  %s312_s25 = int_to_ptr.vmem [resolvable:$true] %s311_s25  ;;  %s5060_s18 = int_to_ptr.vmem [resolvable:$true] %s406_s18 }
  0x60   : > { %s4619_s27 = scalar_lea.hbm %s5339_s3, 4096 }
  0x61   : > { %p4620_p7 = scmp.ne.s32.totalorder %s5339_s3, %s4619_s27  ;;  %p4626_p5 = scmp.lt.u32.totalorder %s4619_s27, %s5339_s3 }
  0x63   : > { %p4622_p12 = pnand %p4620_p7, %p4947_p9 }
  0x65   : > { %p4623_p0 = pneg %p4622_p12 }
  0x67   : > { %p4628_p13 = pnand %p4626_p5, %p4623_p0 }
  0x69   : > { %4631 = shalt.err (!%p4628_p13)
}
  0x6a   : > { %s4632_s8 = scalar_lea.vmem %s312_s25, 4096  ;;  %p4640_p8 = scmp.lt.s32.totalorder %s312_s25, %s312_s25 }
  0x6b   : > { %p4633_p2 = scmp.ne.s32.totalorder %s312_s25, %s4632_s8  ;;  %p4641_p10 = scmp.lt.s32.totalorder %s4632_s8, %s4632_s8 }
  0x6d   : > { %p4635_p6 = pnand %p4633_p2, %p4947_p9  ;;  %p4642_p11 = por %p4641_p10, %p4640_p8 }
  0x6f   : > { %p4636_p4 = pneg %p4635_p6 }
  0x71   : > { %p4643_p1 = pnand %p4642_p11, %p4636_p4 }
  0x73   : > { %4646 = shalt.err (!%p4643_p1)
}
  0x74   : > { %s4832_s4 = smov 128   ;;  %s4833_s29 = smov 8  }
  0x75   : > { %p5384_p7 = scmp.ne.s32.totalorder %s5374_s17, 0  ;;  %s4834_s20 = smov [#allocation14]  }
  0x76   : > { %s324_s19 = sshll.u32 %s4834_s20, 4  ;;  %s4835_s16 = smov [#allocation5]   ;;  %s325_s19 = int_to_ptr.vmem [resolvable:$true] %s324_s19 }
  0x77   : > { %4312 = dma.hbm_to_vmem [thread:$0]  (!%p5384_p7), %s5339_s3, 4096, %s312_s25, [#allocation9], %s4832_s4, %s4832_s4, %s4833_s29  }
  0x78   : > { %s354_s21 = sshll.u32 %s4835_s16, 4  ;;  %s4647_s27 = scalar_lea.hbm %s5342_s6, 1024  ;;  %s5083_s21 = int_to_ptr.vmem [resolvable:$true] %s354_s21 }
  0x79   : > { %p4648_p1 = scmp.ne.s32.totalorder %s5342_s6, %s4647_s27  ;;  %p4654_p5 = scmp.lt.u32.totalorder %s4647_s27, %s5342_s6 }
  0x7b   : > { %p4650_p12 = pnand %p4648_p1, %p4947_p9 }
  0x7d   : > { %p4651_p0 = pneg %p4650_p12 }
  0x7f   : > { %p4656_p13 = pnand %p4654_p5, %p4651_p0 }
  0x81   : > { %4659 = shalt.err (!%p4656_p13)
}
  0x82   : > { %s4660_s4 = scalar_lea.vmem %s325_s19, 1024  ;;  %p4668_p8 = scmp.lt.s32.totalorder %s325_s19, %s325_s19 }
  0x83   : > { %p4661_p2 = scmp.ne.s32.totalorder %s325_s19, %s4660_s4  ;;  %p4669_p10 = scmp.lt.s32.totalorder %s4660_s4, %s4660_s4 }
  0x85   : > { %p4663_p6 = pnand %p4661_p2, %p4947_p9  ;;  %p4670_p11 = por %p4669_p10, %p4668_p8 }
  0x87   : > { %p4664_p4 = pneg %p4663_p6 }
  0x89   : > { %p4671_p3 = pnand %p4670_p11, %p4664_p4 }
  0x8b   : > { %4674 = shalt.err (!%p4671_p3)
}
  0x8c   : > { %4315 = dma.hbm_to_vmem [thread:$0]  (!%p5384_p7), %s5342_s6, 1024, %s325_s19, [#allocation15], %s5383_s9, %s5383_s9, %s5382_s26  }
  0x8d   : > { %p5385_p9 = scmp.eq.s32.totalorder %s4825_s10, 0  ;;  %p5386_p3 = scmp.lt.s32.totalorder %s4825_s10, 6 }
  0x8e   : > { %s4675_s23 = scalar_lea.hbm %s5008_s1, 1024  ;;  %p5388_p0 = scmp.ne.s32.totalorder %s5381_s22, 0 }
  0x8f   : > { %p5089_p1 = pnand %p5386_p3, %p5385_p9  ;;  %p4676_p12 = scmp.ne.s32.totalorder %s5008_s1, %s4675_s23 }
  0x90   : > { %p5389_p5 = pneg %p5388_p0  ;;  %s4680_s16 = scalar_lea.hbm %s5341_s5, 4096 }
  0x91   : > { %p4681_p7 = scmp.lt.u32.totalorder %s5008_s1, %s5341_s5  ;;  %p4682_p6 = scmp.lt.u32.totalorder %s4680_s16, %s4675_s23 }
  0x92   : > { %p4678_p13 = pnand %p4676_p12, %p5389_p5  ;;  %p4684_p8 = scmp.lt.u32.totalorder %s4675_s23, %s5008_s1 }
  0x93   : > { %p4683_p4 = por %p4682_p6, %p4681_p7 }
  0x94   : > { %p4679_p2 = pneg %p4678_p13 }
  0x95   : > { %p4685_p10 = por %p4684_p8, %p4683_p4 }
  0x97   : > { %p4686_p11 = pnand %p4685_p10, %p4679_p2 }
  0x99   : > { %4689 = shalt.err (!%p4686_p11)
}
  0x9a   : > { %s4690_s24 = scalar_lea.vmem %s5060_s18, 1024  ;;  %p5390_p3 = pmov %p5389_p5 }
  0x9b   : > { %p4691_p9 = scmp.ne.s32.totalorder %s5060_s18, %s4690_s24  ;;  %s4836_s27 = smov [#allocation13]  }
  0x9c   : > { %s4695_s8 = sshll.u32 %s4836_s27, 4  ;;  %s4696_s8 = int_to_ptr.vmem [resolvable:$false] %s4695_s8 }
  0x9d   : > { %p4693_p12 = pnand %p4691_p9, %p5390_p3  ;;  %s4697_s2 = scalar_lea.vmem %s4696_s8, 2048 }
  0x9e   : > { %p4698_p13 = scmp.lt.s32.totalorder %s5060_s18, %s4696_s8  ;;  %p4699_p7 = scmp.lt.s32.totalorder %s4697_s2, %s4690_s24 }
  0x9f   : > { %p4694_p5 = pneg %p4693_p12 }
  0xa0   : > { %p4700_p6 = por %p4699_p7, %p4698_p13 }
  0xa2   : > { %p4701_p4 = pnand %p4700_p6, %p4694_p5 }
  0xa4   : > { %4704 = shalt.err (!%p4701_p4)
}
  0xa5   : > { %4325 = dma.hbm_to_vmem [thread:$0]  (!%p5388_p0), %s5008_s1, 1024, %s5060_s18, %s5010_s15, %s5383_s9, %s5383_s9, %s5382_s26  }
  0xa6   : > { %s4705_s30 = scalar_lea.hbm %s5336_s0, 2048  ;;  %p4707_p8 = pneg %p5089_p1 }
  0xa7   : > { %p4706_p2 = scmp.ne.s32.totalorder %s5336_s0, %s4705_s30  ;;  %p4712_p9 = scmp.lt.u32.totalorder %s4705_s30, %s5336_s0 }
  0xa9   : > { %p4708_p10 = pnand %p4707_p8, %p4706_p2 }
  0xab   : > { %p4709_p11 = pneg %p4708_p10 }
  0xad   : > { %p4714_p3 = pnand %p4712_p9, %p4709_p11 }
  0xaf   : > { %4717 = shalt.err (!%p4714_p3)
}
  0xb0   : > { %s4718_s1 = scalar_lea.vmem %s5083_s21, 2048  ;;  %s4725_s15 = scalar_lea.vmem %s5083_s21, 4096 }
  0xb1   : > { %p4719_p0 = scmp.ne.s32.totalorder %s5083_s21, %s4718_s1  ;;  %p4726_p13 = scmp.lt.s32.totalorder %s5083_s21, %s5083_s21 }
  0xb2   : > { %p4727_p7 = scmp.lt.s32.totalorder %s4725_s15, %s4718_s1 }
  0xb3   : > { %p4721_p12 = pnand %p4719_p0, %p4707_p8 }
  0xb4   : > { %p4728_p6 = por %p4727_p7, %p4726_p13 }
  0xb5   : > { %p4722_p5 = pneg %p4721_p12 }
  0xb7   : > { %p4729_p4 = pnand %p4728_p6, %p4722_p5 }
  0xb9   : > { %4732 = shalt.err (!%p4729_p4)
}
  0xba   : > { %4319 = dma.hbm_to_vmem [thread:$0]  (!%p5089_p1), %s5336_s0, 2048, %s5083_s21, [#allocation6], %s5383_s9, %s5383_s9, %s5382_s26  }
  0xbb   : > { %p5391_p2 = scmp.ne.s32.totalorder %s5373_s14, 0 }
  0xbc   : > { %p5392_p8 = scmp.eq.s32.totalorder (!%p5391_p2), %s4914_s11, 0 }
  0xbd   : > { %418 = sbr.rel (%p5391_p2) target bundleno = 2014 (0x7de), region = 52 }
  0xc4   : > { %4784 = dma.done.wait (%p5392_p8), [#allocation6], 2048   ;;  %p5393_p10 = pmov %p5392_p8 }
  0xc5   : > { %p5394_p11 = pmov %p5392_p8 }
  0xc6   : > { %4786 = vsyncadd (%p5393_p10), [#allocation6], 4294965248 }
  0xc7   : > { %4788 = dma.done.wait (%p5394_p11), [#allocation9], 5120   ;;  %p5395_p9 = pmov %p5392_p8 }
  0xc8   : > { %s437_s17 = sand.u32 1, %s4914_s11   ;;  %s439_s26 = sand.u32 1, %s4809_s28  }
  0xc9   : > { %4790 = vsyncadd (%p5395_p9), [#allocation9], 4294962176  ;;  %s3373_s9 = sshll.u32 %s439_s26, 6  ;;  %s438_s14 = scalar_lea.sflag [#allocation12], %s437_s17 }
  0xca   : > { %s5157_s21 = scalar_lea.vmem [#allocation11], %s3373_s9  ;;  %p5396_p1 = scmp.ne.s32.totalorder %s5372_s13, 0 }
  0xcc   : > { %4792 = dma.done.wait (%p5396_p1), %s438_s14, 2048  }
  0xcd   : > { %4794 = vsyncadd (%p5396_p1), %s438_s14, 4294965248  ;;  %s5163_s16 = scalar_lea.vmem [#allocation13], %s3373_s9  ;;  %p5397_p3 = pmov %p5392_p8 }
  0xcf   : > { %4796 = dma.done.wait (%p5397_p3), [#allocation15], 1024   ;;  %p5398_p0 = pmov %p5397_p3 }
  0xd0   : > { %s5399_s12 = sld [smem:[#allocation23_spill]] }
  0xd1   : > { %4798 = vsyncadd (%p5398_p0), [#allocation15], 4294966272 }
  0xd6   : > { %p3376_p12 = scmp.ne.s32.totalorder %s5399_s12, 0 }
  0xd7   : > { %v4401_v0 = vld [vmem:[#allocation8] sm:$0xff] (!%p3376_p12)   ;;  %v4402_v1 = vld [vmem:[#allocation8 + $0x8] sm:$0xff] (!%p3376_p12)   ;;  %v4403_v2 = vld [vmem:[#allocation8 + $0x10] sm:$0xff] (!%p3376_p12)   ;;  %s5400_s24 = sld [smem:[#allocation28_spill]] (!%p3376_p12) }
  0xd8   : > { %518 = sbr.rel (%p3376_p12) target bundleno = 496 (0x1f0), region = 80  ;;  %3898 = vmatprep.subr.bf16.mxu0 (!%p3376_p12), %v4401_v0  ;;  %4186 = vmatprep.subr.bf16.mxu1 (!%p3376_p12), %v4401_v0  ;;  %v4404_v3 = vld [vmem:[#allocation8 + $0x18] sm:$0xff] (!%p3376_p12)   ;;  %v4409_v4 = vld [vmem:[#allocation5] sm:$0xff] (!%p3376_p12)   ;;  %v4406_v7 = vld [vmem:[#allocation8 + $0x28] sm:$0xff] (!%p3376_p12)  }
  0xd9   : > { %3899 = vmatpush3.bf16.msra.mxu0 (!%p3376_p12), %v4401_v0  ;;  %4194 = vmatpush3.bf16.msra.mxu1 (!%p3376_p12), %v4401_v0  ;;  %v4410_v5 = vld [vmem:[#allocation5 + $0x40] sm:$0xff] (!%p3376_p12)   ;;  %v4407_v8 = vld [vmem:[#allocation8 + $0x30] sm:$0xff] (!%p3376_p12)   ;;  %v4408_v9 = vld [vmem:[#allocation8 + $0x38] sm:$0xff] (!%p3376_p12)  }
  0xda   : > { %3900 = vmatprep.subr.bf16.mxu0 (!%p3376_p12), %v4402_v1  ;;  %4187 = vmatprep.subr.bf16.mxu1 (!%p3376_p12), %v4402_v1  ;;  %v4405_v6 = vld [vmem:[#allocation8 + $0x20] sm:$0xff] (!%p3376_p12)   ;;  %v4411_v10 = vld [vmem:[#allocation5 + $0x8] sm:$0xff] (!%p3376_p12)   ;;  %v4413_v12 = vld [vmem:[#allocation5 + $0x10] sm:$0xff] (!%p3376_p12)  }
  0xdb   : > { %3914 = vmatprep.mubr.bf16.mxu0 (!%p3376_p12), %v4409_v4  ;;  %3930 = vmatprep.mubr.bf16.mxu1 (!%p3376_p12), %v4410_v5  ;;  %v4412_v11 = vld [vmem:[#allocation5 + $0x48] sm:$0xff] (!%p3376_p12)   ;;  %v4414_v13 = vld [vmem:[#allocation5 + $0x50] sm:$0xff] (!%p3376_p12)   ;;  %v4415_v14 = vld [vmem:[#allocation5 + $0x18] sm:$0xff] (!%p3376_p12)  }
  0xdc   : > { %v4416_v15 = vld [vmem:[#allocation5 + $0x58] sm:$0xff] (!%p3376_p12)   ;;  %v4417_v16 = vld [vmem:[#allocation5 + $0x20] sm:$0xff] (!%p3376_p12)   ;;  %v4419_v18 = vld [vmem:[#allocation5 + $0x28] sm:$0xff] (!%p3376_p12)  }
  0xdd   : > { %3901 = vmatpush3.bf16.msra.mxu0 (!%p3376_p12), %v4402_v1  ;;  %4195 = vmatpush3.bf16.msra.mxu1 (!%p3376_p12), %v4402_v1  ;;  %v4418_v17 = vld [vmem:[#allocation5 + $0x60] sm:$0xff] (!%p3376_p12)   ;;  %v4420_v19 = vld [vmem:[#allocation5 + $0x68] sm:$0xff] (!%p3376_p12)   ;;  %v4421_v20 = vld [vmem:[#allocation5 + $0x30] sm:$0xff] (!%p3376_p12)  }
  0xde   : > { %3902 = vmatprep.subr.bf16.mxu0 (!%p3376_p12), %v4403_v2  ;;  %4188 = vmatprep.subr.bf16.mxu1 (!%p3376_p12), %v4403_v2  ;;  %v4422_v21 = vld [vmem:[#allocation5 + $0x70] sm:$0xff] (!%p3376_p12)   ;;  %v4423_v22 = vld [vmem:[#allocation5 + $0x38] sm:$0xff] (!%p3376_p12)   ;;  %v5173_v24 = vld [vmem:[%s5400_s24] ss:$0 sm:$0xff] (!%p3376_p12) }
  0xdf   : > { %v4424_v23 = vld [vmem:[#allocation5 + $0x78] sm:$0xff]  }
  0xe1   : > { %3903 = vmatpush3.bf16.msra.mxu0 %v4403_v2  ;;  %4196 = vmatpush3.bf16.msra.mxu1 %v4403_v2 }
  0xe2   : > { %3904 = vmatprep.subr.bf16.mxu0 %v4404_v3  ;;  %4189 = vmatprep.subr.bf16.mxu1 %v4404_v3 }
  0xe5   : > { %3905 = vmatpush3.bf16.msra.mxu0 %v4404_v3  ;;  %4197 = vmatpush3.bf16.msra.mxu1 %v4404_v3 }
  0xe6   : > { %3906 = vmatprep.subr.bf16.mxu0 %v4405_v6  ;;  %4190 = vmatprep.subr.bf16.mxu1 %v4405_v6 }
  0xe9   : > { %3907 = vmatpush3.bf16.msra.mxu0 %v4405_v6  ;;  %4198 = vmatpush3.bf16.msra.mxu1 %v4405_v6 }
  0xea   : > { %3908 = vmatprep.subr.bf16.mxu0 %v4406_v7  ;;  %4191 = vmatprep.subr.bf16.mxu1 %v4406_v7 }
  0xed   : > { %3909 = vmatpush3.bf16.msra.mxu0 %v4406_v7  ;;  %4199 = vmatpush3.bf16.msra.mxu1 %v4406_v7 }
  0xee   : > { %3910 = vmatprep.subr.bf16.mxu0 %v4407_v8  ;;  %4192 = vmatprep.subr.bf16.mxu1 %v4407_v8 }
  0xf1   : > { %3911 = vmatpush3.bf16.msra.mxu0 %v4407_v8  ;;  %4200 = vmatpush3.bf16.msra.mxu1 %v4407_v8 }
  0xf2   : > { %3912 = vmatprep.subr.bf16.mxu0 %v4408_v9  ;;  %4193 = vmatprep.subr.bf16.mxu1 %v4408_v9 }
  0xf5   : > { %3913 = vmatpush3.bf16.msra.mxu0 %v4408_v9  ;;  %4201 = vmatpush3.bf16.msra.mxu1 %v4408_v9 }
  0xf8   : > { %3915 = vmatmul.mubr.bf16.vlgmr.msra.gmra.mrb[0].mxu0 %v4411_v10  ;;  %3931 = vmatmul.mubr.bf16.vlgmr.msra.gmra.mrb[0].mxu1 %v4412_v11 }
  0xf9   : > { %3918 = vmatprep.mubr.bf16.mxu0 %v4413_v12  ;;  %3934 = vmatprep.mubr.bf16.mxu1 %v4414_v13 }
 0x100   : > { %3919 = vmatmul.mubr.bf16.gmra.mrb[4].mxu0 %v4415_v14  ;;  %3935 = vmatmul.mubr.bf16.gmra.mrb[4].mxu1 %v4416_v15 }
 0x101   : > { %3922 = vmatprep.mubr.bf16.mxu0 %v4417_v16  ;;  %3938 = vmatprep.mubr.bf16.mxu1 %v4418_v17 }
 0x108   : > { %3923 = vmatmul.mubr.bf16.gmra.mrb[8].mxu0 %v4419_v18  ;;  %3939 = vmatmul.mubr.bf16.gmra.mrb[8].mxu1 %v4420_v19 }
 0x109   : > { %3926 = vmatprep.mubr.bf16.mxu0 %v4421_v20  ;;  %3942 = vmatprep.mubr.bf16.mxu1 %v4422_v21 }
 0x110   : > { %3927 = vmatmul.mubr.bf16.gmra.mrb[12].mxu0 %v4423_v22  ;;  %3943 = vmatmul.mubr.bf16.gmra.mrb[12].mxu1 %v4424_v23 }
 0x1cb   : > { %v3916_v25 = vpop.f32.mrb[0].mxu0  ;;  %v3932_v26 = vpop.f32.mrb[0].mxu1 }
 0x1cc   : > { %v761_v27 = vadd.f32 %v3916_v25, %v5173_v24  ;;  %v825_v28 = vadd.f32 %v3932_v26, %v5173_v24  ;;  %v752_v29 = vpop.f32.mrb[1].mxu0  ;;  %v816_v30 = vpop.f32.mrb[1].mxu1 }
 0x1cd   : > { %v753_v31 = vadd.f32 %v5173_v24, %v752_v29  ;;  %v817_v32 = vadd.f32 %v5173_v24, %v816_v30  ;;  %v3917_v33 = vpop.f32.mrb[2].mxu0  ;;  %v3933_v34 = vpop.f32.mrb[2].mxu1 }
 0x1ce   : > { %v764_v35 = vadd.f32 %v3917_v33, %v5173_v24  ;;  %v828_v36 = vadd.f32 %v3933_v34, %v5173_v24  ;;  %v755_v37 = vpop.f32.mrb[3].mxu0  ;;  %v819_v38 = vpop.f32.mrb[3].mxu1  ;;  %v881_v41 = vmax.f32 %v761_v27, 0.0  ;;  %v897_v42 = vmax.f32 %v825_v28, 0.0 }
 0x1cf   : > { %v756_v39 = vadd.f32 %v5173_v24, %v755_v37  ;;  %v820_v40 = vadd.f32 %v5173_v24, %v819_v38  ;;  %v879_v45 = vmax.f32 %v753_v31, 0.0  ;;  %v895_v46 = vmax.f32 %v817_v32, 0.0 }
 0x1d0   : > { %v882_v43 = vmax.f32 %v764_v35, 0.0  ;;  %v898_v44 = vmax.f32 %v828_v36, 0.0 }
 0x1d1   : > { %v880_v47 = vmax.f32 %v756_v39, 0.0  ;;  %v896_v48 = vmax.f32 %v820_v40, 0.0 }
 0x1d2   : > { %v912_v49 = vpack.c.bf16 %v882_v43, %v881_v41  ;;  %v920_v50 = vpack.c.bf16 %v898_v44, %v897_v42 }
 0x1d3   : > { %v911_v51 = vpack.c.bf16 %v880_v47, %v879_v45  ;;  %v919_v52 = vpack.c.bf16 %v896_v48, %v895_v46  ;;  %v3920_v53 = vpop.f32.mrb[4].mxu0  ;;  %v3936_v54 = vpop.f32.mrb[4].mxu1 }
 0x1d4   : > { %932 = vst [vmem:[#allocation2 + $0x8] sm:$0xff] %v912_v49  ;;  %950 = vst [vmem:[#allocation4 + $0x8] sm:$0xff] %v912_v49  ;;  %v777_v55 = vadd.f32 %v3920_v53, %v5173_v24  ;;  %v841_v56 = vadd.f32 %v3936_v54, %v5173_v24  ;;  %v768_v57 = vpop.f32.mrb[5].mxu0  ;;  %v832_v58 = vpop.f32.mrb[5].mxu1 }
 0x1d5   : > { %940 = vst [vmem:[#allocation2 + $0x48] sm:$0xff] %v920_v50  ;;  %958 = vst [vmem:[#allocation4 + $0x48] sm:$0xff] %v920_v50  ;;  %v769_v59 = vadd.f32 %v5173_v24, %v768_v57  ;;  %v833_v60 = vadd.f32 %v5173_v24, %v832_v58  ;;  %v3921_v61 = vpop.f32.mrb[6].mxu0  ;;  %v3937_v62 = vpop.f32.mrb[6].mxu1 }
 0x1d6   : > { %931 = vst [vmem:[#allocation2] sm:$0xff] %v911_v51  ;;  %949 = vst [vmem:[#allocation4] sm:$0xff] %v911_v51  ;;  %v780_v63 = vadd.f32 %v3921_v61, %v5173_v24  ;;  %v844_v0 = vadd.f32 %v3937_v62, %v5173_v24  ;;  %v771_v1 = vpop.f32.mrb[7].mxu0  ;;  %v835_v2 = vpop.f32.mrb[7].mxu1  ;;  %v885_v5 = vmax.f32 %v777_v55, 0.0  ;;  %v901_v6 = vmax.f32 %v841_v56, 0.0 }
 0x1d7   : > { %939 = vst [vmem:[#allocation2 + $0x40] sm:$0xff] %v919_v52  ;;  %957 = vst [vmem:[#allocation4 + $0x40] sm:$0xff] %v919_v52  ;;  %v772_v3 = vadd.f32 %v5173_v24, %v771_v1  ;;  %v836_v4 = vadd.f32 %v5173_v24, %v835_v2  ;;  %v883_v9 = vmax.f32 %v769_v59, 0.0  ;;  %v899_v10 = vmax.f32 %v833_v60, 0.0 }
 0x1d8   : > { %v886_v7 = vmax.f32 %v780_v63, 0.0  ;;  %v902_v8 = vmax.f32 %v844_v0, 0.0 }
 0x1d9   : > { %v884_v11 = vmax.f32 %v772_v3, 0.0  ;;  %v900_v12 = vmax.f32 %v836_v4, 0.0 }
 0x1da   : > { %v914_v13 = vpack.c.bf16 %v886_v7, %v885_v5  ;;  %v922_v14 = vpack.c.bf16 %v902_v8, %v901_v6 }
 0x1db   : > { %v913_v15 = vpack.c.bf16 %v884_v11, %v883_v9  ;;  %v921_v16 = vpack.c.bf16 %v900_v12, %v899_v10  ;;  %v3924_v17 = vpop.f32.mrb[8].mxu0  ;;  %v3940_v18 = vpop.f32.mrb[8].mxu1 }
 0x1dc   : > { %934 = vst [vmem:[#allocation2 + $0x18] sm:$0xff] %v914_v13  ;;  %952 = vst [vmem:[#allocation4 + $0x18] sm:$0xff] %v914_v13  ;;  %v793_v19 = vadd.f32 %v3924_v17, %v5173_v24  ;;  %v857_v20 = vadd.f32 %v3940_v18, %v5173_v24  ;;  %v784_v21 = vpop.f32.mrb[9].mxu0  ;;  %v848_v22 = vpop.f32.mrb[9].mxu1 }
 0x1dd   : > { %942 = vst [vmem:[#allocation2 + $0x58] sm:$0xff] %v922_v14  ;;  %960 = vst [vmem:[#allocation4 + $0x58] sm:$0xff] %v922_v14  ;;  %v785_v23 = vadd.f32 %v5173_v24, %v784_v21  ;;  %v849_v25 = vadd.f32 %v5173_v24, %v848_v22  ;;  %v3925_v26 = vpop.f32.mrb[10].mxu0  ;;  %v3941_v27 = vpop.f32.mrb[10].mxu1 }
 0x1de   : > { %933 = vst [vmem:[#allocation2 + $0x10] sm:$0xff] %v913_v15  ;;  %951 = vst [vmem:[#allocation4 + $0x10] sm:$0xff] %v913_v15  ;;  %v796_v28 = vadd.f32 %v3925_v26, %v5173_v24  ;;  %v860_v29 = vadd.f32 %v3941_v27, %v5173_v24  ;;  %v787_v30 = vpop.f32.mrb[11].mxu0  ;;  %v851_v31 = vpop.f32.mrb[11].mxu1  ;;  %v889_v34 = vmax.f32 %v793_v19, 0.0  ;;  %v905_v35 = vmax.f32 %v857_v20, 0.0 }
 0x1df   : > { %941 = vst [vmem:[#allocation2 + $0x50] sm:$0xff] %v921_v16  ;;  %959 = vst [vmem:[#allocation4 + $0x50] sm:$0xff] %v921_v16  ;;  %v788_v32 = vadd.f32 %v5173_v24, %v787_v30  ;;  %v852_v33 = vadd.f32 %v5173_v24, %v851_v31  ;;  %v887_v38 = vmax.f32 %v785_v23, 0.0  ;;  %v903_v39 = vmax.f32 %v849_v25, 0.0 }
 0x1e0   : > { %v890_v36 = vmax.f32 %v796_v28, 0.0  ;;  %v906_v37 = vmax.f32 %v860_v29, 0.0 }
 0x1e1   : > { %v888_v40 = vmax.f32 %v788_v32, 0.0  ;;  %v904_v41 = vmax.f32 %v852_v33, 0.0 }
 0x1e2   : > { %v916_v42 = vpack.c.bf16 %v890_v36, %v889_v34  ;;  %v924_v43 = vpack.c.bf16 %v906_v37, %v905_v35 }
 0x1e3   : > { %v915_v44 = vpack.c.bf16 %v888_v40, %v887_v38  ;;  %v923_v45 = vpack.c.bf16 %v904_v41, %v903_v39  ;;  %v3928_v46 = vpop.f32.mrb[12].mxu0  ;;  %v3944_v47 = vpop.f32.mrb[12].mxu1 }
 0x1e4   : > { %936 = vst [vmem:[#allocation2 + $0x28] sm:$0xff] %v916_v42  ;;  %954 = vst [vmem:[#allocation4 + $0x28] sm:$0xff] %v916_v42  ;;  %v809_v48 = vadd.f32 %v3928_v46, %v5173_v24  ;;  %v873_v49 = vadd.f32 %v3944_v47, %v5173_v24  ;;  %v800_v50 = vpop.f32.mrb[13].mxu0  ;;  %v864_v51 = vpop.f32.mrb[13].mxu1 }
 0x1e5   : > { %944 = vst [vmem:[#allocation2 + $0x68] sm:$0xff] %v924_v43  ;;  %962 = vst [vmem:[#allocation4 + $0x68] sm:$0xff] %v924_v43  ;;  %v801_v52 = vadd.f32 %v5173_v24, %v800_v50  ;;  %v865_v53 = vadd.f32 %v5173_v24, %v864_v51  ;;  %v3929_v54 = vpop.f32.mrb[14].mxu0  ;;  %v3945_v55 = vpop.f32.mrb[14].mxu1 }
 0x1e6   : > { %935 = vst [vmem:[#allocation2 + $0x20] sm:$0xff] %v915_v44  ;;  %953 = vst [vmem:[#allocation4 + $0x20] sm:$0xff] %v915_v44  ;;  %v812_v56 = vadd.f32 %v3929_v54, %v5173_v24  ;;  %v876_v57 = vadd.f32 %v3945_v55, %v5173_v24  ;;  %v803_v58 = vpop.f32.mrb[15].mxu0  ;;  %v867_v59 = vpop.f32.mrb[15].mxu1  ;;  %v893_v62 = vmax.f32 %v809_v48, 0.0  ;;  %v909_v63 = vmax.f32 %v873_v49, 0.0 }
 0x1e7   : > { %943 = vst [vmem:[#allocation2 + $0x60] sm:$0xff] %v923_v45  ;;  %961 = vst [vmem:[#allocation4 + $0x60] sm:$0xff] %v923_v45  ;;  %v804_v60 = vadd.f32 %v5173_v24, %v803_v58  ;;  %v868_v61 = vadd.f32 %v5173_v24, %v867_v59  ;;  %v891_v2 = vmax.f32 %v801_v52, 0.0  ;;  %v907_v3 = vmax.f32 %v865_v53, 0.0 }
 0x1e8   : > { %v894_v0 = vmax.f32 %v812_v56, 0.0  ;;  %v910_v1 = vmax.f32 %v876_v57, 0.0 }
 0x1e9   : > { %v892_v4 = vmax.f32 %v804_v60, 0.0  ;;  %v908_v5 = vmax.f32 %v868_v61, 0.0 }
 0x1ea   : > { %v918_v6 = vpack.c.bf16 %v894_v0, %v893_v62  ;;  %v926_v7 = vpack.c.bf16 %v910_v1, %v909_v63 }
 0x1eb   : > { %v917_v8 = vpack.c.bf16 %v892_v4, %v891_v2  ;;  %v925_v9 = vpack.c.bf16 %v908_v5, %v907_v3 }
 0x1ec   : > { %938 = vst [vmem:[#allocation2 + $0x38] sm:$0xff] %v918_v6  ;;  %956 = vst [vmem:[#allocation4 + $0x38] sm:$0xff] %v918_v6 }
 0x1ed   : > { %946 = vst [vmem:[#allocation2 + $0x78] sm:$0xff] %v926_v7  ;;  %964 = vst [vmem:[#allocation4 + $0x78] sm:$0xff] %v926_v7 }
 0x1ee   : > { %937 = vst [vmem:[#allocation2 + $0x30] sm:$0xff] %v917_v8  ;;  %955 = vst [vmem:[#allocation4 + $0x30] sm:$0xff] %v917_v8 }
 0x1ef   : > { %945 = vst [vmem:[#allocation2 + $0x70] sm:$0xff] %v925_v9  ;;  %963 = vst [vmem:[#allocation4 + $0x70] sm:$0xff] %v925_v9 }
 0x1f0 PF: > { %s5401_s27 = sld [smem:[#allocation23_spill]] }
 0x1f6   : > { %s3402_s8 = sadd.s32 4294967295, %s5401_s27  ;;  %p965_p5 = scmp.ge.s32.totalorder %s5401_s27, 1 }
 0x1f7   : > { %p966_p13 = scmp.le.s32.totalorder %s5401_s27, 4  ;;  %p970_p7 = scmp.lt.s32.totalorder %s3402_s8, 0 }
 0x1f8   : > { %s971_s2 = ssub.s32 0, %s3402_s8 }
 0x1f9   : > { %s3403_s25 = smin.u32 %s3402_s8, %s971_s2  ;;  %p5210_p6 = pnand %p966_p13, %p965_p5 }
 0x1fa   : > { %s973_s4 = sand.u32 1, %s3403_s25  }
 0x1fb   : > { %s974_s29 = ssub.s32 0, %s973_s4  ;;  %p968_p2 = pneg %p5210_p6 }
 0x1fc   : > { %s5425_s29 = smov (!%p970_p7, %s974_s29), %s973_s4 }
 0x1fd   : > { %p3405_p4 = scmp.lt.s32.totalorder %s5425_s29, 0  ;;  %s980_s23 = sadd.s32 2, %s5425_s29 }
 0x1ff   : > { %s5427_s23 = smov (!%p3405_p4, %s980_s23), %s5425_s29 }
 0x200   : > { %p982_p8 = scmp.eq.s32.totalorder %s5427_s23, 0 }
 0x202   : > { %p983_p10 = pnand %p982_p8, %p968_p2 }
 0x203   : > { %v1032_v24 = vld [vmem:[#allocation2 + $0x40] sm:$0xff] (!%p983_p10)  ;;  %v1033_v11 = vld [vmem:[#allocation2 + $0x48] sm:$0xff] (!%p983_p10)  ;;  %v1034_v13 = vld [vmem:[#allocation2 + $0x50] sm:$0xff] (!%p983_p10) }
 0x204   : > { %986 = sbr.rel (%p983_p10) target bundleno = 1107 (0x453), region = 84  ;;  %v1024_v10 = vld [vmem:[#allocation2] sm:$0xff] (!%p983_p10)  ;;  %3554 = vmatprep.subr.bf16.mxu0 (!%p983_p10), %v1032_v24  ;;  %v1025_v12 = vld [vmem:[#allocation2 + $0x8] sm:$0xff] (!%p983_p10)  ;;  %v1026_v15 = vld [vmem:[#allocation2 + $0x10] sm:$0xff] (!%p983_p10) }
 0x205   : > { %3555 = vmatpush3.bf16.msra.mxu0 (!%p983_p10), %v1024_v10  ;;  %v4427_v14 = vld [vmem:[#allocation10 + $0x4] ss:$8 sps:$4 sm:$0xff] (!%p983_p10)   ;;  %v1035_v16 = vld [vmem:[#allocation2 + $0x58] sm:$0xff] (!%p983_p10)  ;;  %v1038_v22 = vld [vmem:[#allocation2 + $0x70] sm:$0xff] (!%p983_p10) }
 0x206   : > { %3556 = vmatprep.subr.bf16.mxu0 (!%p983_p10), %v1033_v11  ;;  %1232 = vmatprep.mubr.bf16.mxu0 (!%p983_p10), %v4427_v14  ;;  %v1027_v17 = vld [vmem:[#allocation2 + $0x18] sm:$0xff] (!%p983_p10)  ;;  %v1036_v18 = vld [vmem:[#allocation2 + $0x60] sm:$0xff] (!%p983_p10)  ;;  %v1037_v20 = vld [vmem:[#allocation2 + $0x68] sm:$0xff] (!%p983_p10) }
 0x207   : > { %v1028_v19 = vld [vmem:[#allocation2 + $0x20] sm:$0xff] (!%p983_p10)  ;;  %v1029_v21 = vld [vmem:[#allocation2 + $0x28] sm:$0xff] (!%p983_p10)  ;;  %v1030_v23 = vld [vmem:[#allocation2 + $0x30] sm:$0xff] (!%p983_p10) }
 0x208   : > { %v1039_v25 = vld [vmem:[#allocation2 + $0x78] sm:$0xff] (!%p983_p10)  ;;  %v4473_v27 = vld [vmem:[%s5163_s16] sm:$0xff] (!%p983_p10)   ;;  %v4474_v28 = vld [vmem:[%s5163_s16 + $0x8] sm:$0xff] (!%p983_p10)  }
 0x209   : > { %3557 = vmatpush3.bf16.msra.mxu0 (!%p983_p10), %v1025_v12  ;;  %v1031_v26 = vld [vmem:[#allocation2 + $0x38] sm:$0xff] (!%p983_p10)  ;;  %v4425_v29 = vld [vmem:[#allocation10] ss:$8 sps:$4 sm:$0xff] (!%p983_p10)   ;;  %3946 = vmatprep.subr.bf16.mxu1 (!%p983_p10), %v4473_v27  ;;  %v4475_v31 = vld [vmem:[%s5163_s16 + $0x10] sm:$0xff] (!%p983_p10)  }
 0x20a   : > { %3558 = vmatprep.subr.bf16.mxu0 (!%p983_p10), %v1034_v13  ;;  %v4428_v30 = vld [vmem:[#allocation10 + $0x14] ss:$8 sps:$4 sm:$0xff] (!%p983_p10)   ;;  %3947 = vmatpush3.bf16.msra.mxu1 (!%p983_p10), %v4473_v27  ;;  %v1397_v32 = vld [vmem:[#allocation4] sm:$0xff] (!%p983_p10)  ;;  %v4430_v34 = vld [vmem:[#allocation10 + $0x10] ss:$8 sps:$4 sm:$0xff] (!%p983_p10)  }
 0x20b   : > { %3948 = vmatprep.subr.bf16.mxu1 %v4474_v28  ;;  %v4476_v33 = vld [vmem:[%s5163_s16 + $0x18] sm:$0xff]   ;;  %3962 = vmatprep.mubr.bf16.mxu1 %v1397_v32  ;;  %v4431_v35 = vld [vmem:[#allocation10 + $0x24] ss:$8 sps:$4 sm:$0xff]   ;;  %v4433_v37 = vld [vmem:[#allocation10 + $0x20] ss:$8 sps:$4 sm:$0xff]  }
 0x20c   : > { %v4477_v36 = vld [vmem:[%s5163_s16 + $0x20] sm:$0xff]   ;;  %v4478_v38 = vld [vmem:[%s5163_s16 + $0x28] sm:$0xff]   ;;  %v4434_v39 = vld [vmem:[#allocation10 + $0x34] ss:$8 sps:$4 sm:$0xff]  }
 0x20d   : > { %3559 = vmatpush3.bf16.msra.mxu0 %v1026_v15  ;;  %v4479_v40 = vld [vmem:[%s5163_s16 + $0x30] sm:$0xff]   ;;  %v4480_v41 = vld [vmem:[%s5163_s16 + $0x38] sm:$0xff]   ;;  %v4437_v43 = vld [vmem:[#allocation10 + $0x44] ss:$8 sps:$4 sm:$0xff]  }
 0x20e   : > { %3560 = vmatprep.subr.bf16.mxu0 %v1035_v16  ;;  %3949 = vmatpush3.bf16.msra.mxu1 %v4474_v28  ;;  %v4436_v42 = vld [vmem:[#allocation10 + $0x30] ss:$8 sps:$4 sm:$0xff]   ;;  %v4481_v44 = vld [vmem:[%s5157_s21] sm:$0xff]   ;;  %v1398_v45 = vld [vmem:[#allocation4 + $0x8] sm:$0xff] }
 0x20f   : > { %3950 = vmatprep.subr.bf16.mxu1 %v4475_v31  ;;  %v1399_v46 = vld [vmem:[#allocation4 + $0x10] sm:$0xff]  ;;  %v4482_v47 = vld [vmem:[%s5157_s21 + $0x8] sm:$0xff]   ;;  %v1400_v51 = vld [vmem:[#allocation4 + $0x18] sm:$0xff] }
 0x210   : > { %v4439_v48 = vld [vmem:[#allocation10 + $0x40] ss:$8 sps:$4 sm:$0xff]   ;;  %v4440_v49 = vld [vmem:[#allocation10 + $0x54] ss:$8 sps:$4 sm:$0xff]   ;;  %v4442_v54 = vld [vmem:[#allocation10 + $0x50] ss:$8 sps:$4 sm:$0xff]  }
 0x211   : > { %3561 = vmatpush3.bf16.msra.mxu0 %v1027_v17  ;;  %v4483_v50 = vld [vmem:[%s5157_s21 + $0x10] sm:$0xff]   ;;  %v1401_v52 = vld [vmem:[#allocation4 + $0x20] sm:$0xff]  ;;  %v4484_v53 = vld [vmem:[%s5157_s21 + $0x18] sm:$0xff]  }
 0x212   : > { %3562 = vmatprep.subr.bf16.mxu0 %v1036_v18  ;;  %3951 = vmatpush3.bf16.msra.mxu1 %v4475_v31  ;;  %v4443_v55 = vld [vmem:[#allocation10 + $0x64] ss:$8 sps:$4 sm:$0xff]   ;;  %v1403_v57 = vld [vmem:[#allocation4 + $0x30] sm:$0xff]  ;;  %v4445_v58 = vld [vmem:[#allocation10 + $0x60] ss:$8 sps:$4 sm:$0xff]  }
 0x213   : > { %3952 = vmatprep.subr.bf16.mxu1 %v4476_v33  ;;  %v1402_v56 = vld [vmem:[#allocation4 + $0x28] sm:$0xff]  ;;  %v4446_v59 = vld [vmem:[#allocation10 + $0x74] ss:$8 sps:$4 sm:$0xff]   ;;  %v1405_v61 = vld [vmem:[#allocation4 + $0x40] sm:$0xff] }
 0x214   : > { %v1404_v60 = vld [vmem:[#allocation4 + $0x38] sm:$0xff]  ;;  %v4449_v63 = vld [vmem:[#allocation10 + $0x84] ss:$8 sps:$4 sm:$0xff]   ;;  %v1407_v1 = vld [vmem:[#allocation4 + $0x50] sm:$0xff] }
 0x215   : > { %3563 = vmatpush3.bf16.msra.mxu0 %v1028_v19  ;;  %v4448_v62 = vld [vmem:[#allocation10 + $0x70] ss:$8 sps:$4 sm:$0xff]   ;;  %v1406_v0 = vld [vmem:[#allocation4 + $0x48] sm:$0xff]  ;;  %v4452_v3 = vld [vmem:[#allocation10 + $0x94] ss:$8 sps:$4 sm:$0xff]  }
 0x216   : > { %3564 = vmatprep.subr.bf16.mxu0 %v1037_v20  ;;  %3953 = vmatpush3.bf16.msra.mxu1 %v4476_v33  ;;  %v4451_v2 = vld [vmem:[#allocation10 + $0x80] ss:$8 sps:$4 sm:$0xff]   ;;  %v1408_v4 = vld [vmem:[#allocation4 + $0x58] sm:$0xff]  ;;  %v4455_v7 = vld [vmem:[#allocation10 + $0xa4] ss:$8 sps:$4 sm:$0xff]  }
 0x217   : > { %3954 = vmatprep.subr.bf16.mxu1 %v4477_v36  ;;  %v1409_v5 = vld [vmem:[#allocation4 + $0x60] sm:$0xff]  ;;  %v4454_v6 = vld [vmem:[#allocation10 + $0x90] ss:$8 sps:$4 sm:$0xff]   ;;  %v1410_v8 = vld [vmem:[#allocation4 + $0x68] sm:$0xff] }
 0x218   : > { %v4457_v9 = vld [vmem:[#allocation10 + $0xa0] ss:$8 sps:$4 sm:$0xff]   ;;  %v4458_v24 = vld [vmem:[#allocation10 + $0xb4] ss:$8 sps:$4 sm:$0xff]   ;;  %v4460_v11 = vld [vmem:[#allocation10 + $0xb0] ss:$8 sps:$4 sm:$0xff]  }
 0x219   : > { %3565 = vmatpush3.bf16.msra.mxu0 %v1029_v21  ;;  %v4485_v10 = vld [vmem:[%s5157_s21 + $0x20] sm:$0xff]   ;;  %v4486_v13 = vld [vmem:[%s5157_s21 + $0x28] sm:$0xff]   ;;  %v1411_v14 = vld [vmem:[#allocation4 + $0x70] sm:$0xff] }
 0x21a   : > { %3566 = vmatprep.subr.bf16.mxu0 %v1038_v22  ;;  %3955 = vmatpush3.bf16.msra.mxu1 %v4477_v36  ;;  %v4461_v12 = vld [vmem:[#allocation10 + $0xc4] ss:$8 sps:$4 sm:$0xff]   ;;  %v1412_v15 = vld [vmem:[#allocation4 + $0x78] sm:$0xff]  ;;  %v4487_v16 = vld [vmem:[%s5157_s21 + $0x30] sm:$0xff]  }
 0x21b   : > { %3956 = vmatprep.subr.bf16.mxu1 %v4478_v38  ;;  %v4463_v17 = vld [vmem:[#allocation10 + $0xc0] ss:$8 sps:$4 sm:$0xff]   ;;  %v4464_v18 = vld [vmem:[#allocation10 + $0xd4] ss:$8 sps:$4 sm:$0xff]   ;;  %v4466_v20 = vld [vmem:[#allocation10 + $0xd0] ss:$8 sps:$4 sm:$0xff]  }
 0x21c   : > { %v4488_v19 = vld [vmem:[%s5157_s21 + $0x38] sm:$0xff]   ;;  %v4467_v21 = vld [vmem:[#allocation10 + $0xe4] ss:$8 sps:$4 sm:$0xff]   ;;  %v4469_v22 = vld [vmem:[#allocation10 + $0xe0] ss:$8 sps:$4 sm:$0xff]  }
 0x21d   : > { %3567 = vmatpush3.bf16.msra.mxu0 %v1030_v23  ;;  %v4470_v23 = vld [vmem:[#allocation10 + $0xf4] ss:$8 sps:$4 sm:$0xff]  }
 0x21e   : > { %3568 = vmatprep.subr.bf16.mxu0 %v1039_v25  ;;  %3957 = vmatpush3.bf16.msra.mxu1 %v4478_v38  ;;  %v4472_v25 = vld [vmem:[#allocation10 + $0xf0] ss:$8 sps:$4 sm:$0xff]  }
 0x21f   : > { %3958 = vmatprep.subr.bf16.mxu1 %v4479_v40 }
 0x221   : > { %3569 = vmatpush3.bf16.msra.mxu0 %v1031_v26 }
 0x222   : > { %3959 = vmatpush3.bf16.msra.mxu1 %v4479_v40 }
 0x223   : > { %3960 = vmatprep.subr.bf16.mxu1 %v4480_v41 }
 0x224   : > { %1233 = vmatmul.mubr.bf16.vlgmr.msra.gmra.mrb[0].mxu0 %v4425_v29 }
 0x225   : > { %1240 = vmatprep.mubr.bf16.mxu0 %v4428_v30 }
 0x226   : > { %3961 = vmatpush3.bf16.msra.mxu1 %v4480_v41 }
 0x227   : > { %3994 = vmatprep.subr.bf16.mxu1 %v4481_v44 }
 0x229   : > { %3963 = vmatmul.mubr.bf16.vlgmr.msra.gmra.mrb[0].mxu1 %v1398_v45 }
 0x22a   : > { %3966 = vmatprep.mubr.bf16.mxu1 %v1399_v46  ;;  %3995 = vmatpush3.bf16.msra.mxu1 %v4481_v44 }
 0x22b   : > { %3996 = vmatprep.subr.bf16.mxu1 %v4482_v47 }
 0x22c   : > { %1241 = vmatmul.mubr.bf16.gmra.mrb[4].mxu0 %v4430_v34 }
 0x22d   : > { %1248 = vmatprep.mubr.bf16.mxu0 %v4431_v35 }
 0x22e   : > { %3997 = vmatpush3.bf16.msra.mxu1 %v4482_v47 }
 0x22f   : > { %3998 = vmatprep.subr.bf16.mxu1 %v4483_v50 }
 0x231   : > { %3967 = vmatmul.mubr.bf16.gmra.mrb[4].mxu1 %v1400_v51 }
 0x232   : > { %3970 = vmatprep.mubr.bf16.mxu1 %v1401_v52  ;;  %3999 = vmatpush3.bf16.msra.mxu1 %v4483_v50 }
 0x233   : > { %4000 = vmatprep.subr.bf16.mxu1 %v4484_v53 }
 0x234   : > { %1249 = vmatmul.mubr.bf16.gmra.mrb[8].mxu0 %v4433_v37 }
 0x235   : > { %1256 = vmatprep.mubr.bf16.mxu0 %v4434_v39 }
 0x236   : > { %4001 = vmatpush3.bf16.msra.mxu1 %v4484_v53 }
 0x237   : > { %4002 = vmatprep.subr.bf16.mxu1 %v4485_v10 }
 0x239   : > { %3971 = vmatmul.mubr.bf16.gmra.mrb[8].mxu1 %v1402_v56 }
 0x23a   : > { %3974 = vmatprep.mubr.bf16.mxu1 %v1403_v57  ;;  %4003 = vmatpush3.bf16.msra.mxu1 %v4485_v10 }
 0x23b   : > { %4004 = vmatprep.subr.bf16.mxu1 %v4486_v13 }
 0x23c   : > { %1257 = vmatmul.mubr.bf16.gmra.mrb[12].mxu0 %v4436_v42 }
 0x23d   : > { %1264 = vmatprep.mubr.bf16.mxu0 %v4437_v43 }
 0x23e   : > { %4005 = vmatpush3.bf16.msra.mxu1 %v4486_v13 }
 0x23f   : > { %4006 = vmatprep.subr.bf16.mxu1 %v4487_v16 }
 0x241   : > { %3975 = vmatmul.mubr.bf16.gmra.mrb[12].mxu1 %v1404_v60 }
 0x242   : > { %3978 = vmatprep.mubr.bf16.mxu1 %v1405_v61  ;;  %4007 = vmatpush3.bf16.msra.mxu1 %v4487_v16 }
 0x243   : > { %4008 = vmatprep.subr.bf16.mxu1 %v4488_v19 }
 0x244   : > { %1265 = vmatmul.mubr.bf16.gmra.mrb[16].mxu0 %v4439_v48 }
 0x245   : > { %1272 = vmatprep.mubr.bf16.mxu0 %v4440_v49 }
 0x246   : > { %4009 = vmatpush3.bf16.msra.mxu1 %v4488_v19 }
 0x249   : > { %3979 = vmatmul.mubr.bf16.gmra.mrb[16].mxu1 %v1406_v0 }
 0x24a   : > { %3982 = vmatprep.mubr.bf16.mxu1 %v1407_v1 }
 0x24c   : > { %1273 = vmatmul.mubr.bf16.gmra.mrb[20].mxu0 %v4442_v54 }
 0x24d   : > { %1280 = vmatprep.mubr.bf16.mxu0 %v4443_v55 }
 0x251   : > { %3983 = vmatmul.mubr.bf16.gmra.mrb[20].mxu1 %v1408_v4 }
 0x252   : > { %3986 = vmatprep.mubr.bf16.mxu1 %v1409_v5 }
 0x254   : > { %1281 = vmatmul.mubr.bf16.gmra.mrb[24].mxu0 %v4445_v58 }
 0x255   : > { %1288 = vmatprep.mubr.bf16.mxu0 %v4446_v59 }
 0x259   : > { %3987 = vmatmul.mubr.bf16.gmra.mrb[24].mxu1 %v1410_v8 }
 0x25a   : > { %3990 = vmatprep.mubr.bf16.mxu1 %v1411_v14 }
 0x25c   : > { %1289 = vmatmul.mubr.bf16.gmra.mrb[28].mxu0 %v4448_v62 }
 0x25d   : > { %1296 = vmatprep.mubr.bf16.mxu0 %v4449_v63 }
 0x261   : > { %3991 = vmatmul.mubr.bf16.gmra.mrb[28].mxu1 %v1412_v15 }
 0x264   : > { %1297 = vmatmul.mubr.bf16.gmra.mrb[32].mxu0 %v4451_v2 }
 0x265   : > { %1304 = vmatprep.mubr.bf16.mxu0 %v4452_v3 }
 0x26c   : > { %1305 = vmatmul.mubr.bf16.gmra.mrb[36].mxu0 %v4454_v6 }
 0x26d   : > { %1312 = vmatprep.mubr.bf16.mxu0 %v4455_v7 }
 0x274   : > { %1313 = vmatmul.mubr.bf16.gmra.mrb[40].mxu0 %v4457_v9 }
 0x275   : > { %1320 = vmatprep.mubr.bf16.mxu0 %v4458_v24 }
 0x27c   : > { %1321 = vmatmul.mubr.bf16.gmra.mrb[44].mxu0 %v4460_v11 }
 0x27d   : > { %1328 = vmatprep.mubr.bf16.mxu0 %v4461_v12 }
 0x284   : > { %1329 = vmatmul.mubr.bf16.gmra.mrb[48].mxu0 %v4463_v17 }
 0x285   : > { %1336 = vmatprep.mubr.bf16.mxu0 %v4464_v18 }
 0x28c   : > { %1337 = vmatmul.mubr.bf16.gmra.mrb[52].mxu0 %v4466_v20 }
 0x28d   : > { %1344 = vmatprep.mubr.bf16.mxu0 %v4467_v21 }
 0x294   : > { %1345 = vmatmul.mubr.bf16.gmra.mrb[56].mxu0 %v4469_v22 }
 0x295   : > { %1352 = vmatprep.mubr.bf16.mxu0 %v4470_v23 }
 0x29c   : > { %1353 = vmatmul.mubr.bf16.gmra.mrb[60].mxu0 %v4472_v25 }
 0x2f7   : > { %v3570_v26 = vpop.f32.mrb[0].mxu0 }
 0x2f8   : > { %v3571_v27 = vpop.f32.mrb[1].mxu0 }
 0x2f9   : > { %v3572_v28 = vadd.f32 %v3571_v27, %v3570_v26  ;;  %v3573_v29 = vpop.f32.mrb[2].mxu0 }
 0x2fa   : > { %v3574_v30 = vpop.f32.mrb[3].mxu0 }
 0x2fb   : > { %v3575_v31 = vadd.f32 %v3574_v30, %v3573_v29 }
 0x2fd   : > { %v1361_v32 = vpack.c.bf16 %v3575_v31, %v3572_v28 }
 0x2ff   : > { %v3576_v33 = vpop.f32.mrb[4].mxu0  ;;  %4010 = vmatprep.mubr.bf16.mxu1 %v1361_v32 }
 0x300   : > { %v3577_v34 = vpop.f32.mrb[5].mxu0 }
 0x301   : > { %v3578_v35 = vadd.f32 %v3577_v34, %v3576_v33  ;;  %v3579_v36 = vpop.f32.mrb[6].mxu0 }
 0x302   : > { %v3580_v37 = vpop.f32.mrb[7].mxu0 }
 0x303   : > { %v3581_v38 = vadd.f32 %v3580_v37, %v3579_v36 }
 0x305   : > { %v1362_v39 = vpack.c.bf16 %v3581_v38, %v3578_v35 }
 0x307   : > { %v3582_v40 = vpop.f32.mrb[8].mxu0  ;;  %4011 = vmatmul.mubr.bf16.vlgmr.msra.gmra.mrb[0].mxu1 %v1362_v39 }
 0x308   : > { %v3583_v41 = vpop.f32.mrb[9].mxu0 }
 0x309   : > { %v3584_v42 = vadd.f32 %v3583_v41, %v3582_v40  ;;  %v3585_v43 = vpop.f32.mrb[10].mxu0 }
 0x30a   : > { %v3586_v44 = vpop.f32.mrb[11].mxu0 }
 0x30b   : > { %v3587_v45 = vadd.f32 %v3586_v44, %v3585_v43 }
 0x30d   : > { %v1363_v46 = vpack.c.bf16 %v3587_v45, %v3584_v42 }
 0x30f   : > { %v3588_v47 = vpop.f32.mrb[12].mxu0  ;;  %4014 = vmatprep.mubr.bf16.mxu1 %v1363_v46 }
 0x310   : > { %v3589_v48 = vpop.f32.mrb[13].mxu0 }
 0x311   : > { %v3590_v49 = vadd.f32 %v3589_v48, %v3588_v47  ;;  %v3591_v50 = vpop.f32.mrb[14].mxu0 }
 0x312   : > { %v3592_v51 = vpop.f32.mrb[15].mxu0 }
 0x313   : > { %v3593_v52 = vadd.f32 %v3592_v51, %v3591_v50 }
 0x315   : > { %v1364_v53 = vpack.c.bf16 %v3593_v52, %v3590_v49 }
 0x317   : > { %v3594_v54 = vpop.f32.mrb[16].mxu0  ;;  %4015 = vmatmul.mubr.bf16.gmra.mrb[4].mxu1 %v1364_v53 }
 0x318   : > { %v3595_v55 = vpop.f32.mrb[17].mxu0 }
 0x319   : > { %v3596_v56 = vadd.f32 %v3595_v55, %v3594_v54  ;;  %v3597_v57 = vpop.f32.mrb[18].mxu0 }
 0x31a   : > { %v3598_v58 = vpop.f32.mrb[19].mxu0 }
 0x31b   : > { %v3599_v59 = vadd.f32 %v3598_v58, %v3597_v57 }
 0x31d   : > { %v1365_v60 = vpack.c.bf16 %v3599_v59, %v3596_v56 }
 0x31f   : > { %v3600_v61 = vpop.f32.mrb[20].mxu0  ;;  %4018 = vmatprep.mubr.bf16.mxu1 %v1365_v60 }
 0x320   : > { %v3601_v62 = vpop.f32.mrb[21].mxu0 }
 0x321   : > { %v3602_v63 = vadd.f32 %v3601_v62, %v3600_v61  ;;  %v3603_v0 = vpop.f32.mrb[22].mxu0 }
 0x322   : > { %v3604_v1 = vpop.f32.mrb[23].mxu0 }
 0x323   : > { %v3605_v2 = vadd.f32 %v3604_v1, %v3603_v0 }
 0x325   : > { %v1366_v3 = vpack.c.bf16 %v3605_v2, %v3602_v63 }
 0x327   : > { %v3606_v4 = vpop.f32.mrb[24].mxu0  ;;  %4019 = vmatmul.mubr.bf16.gmra.mrb[8].mxu1 %v1366_v3 }
 0x328   : > { %v3607_v5 = vpop.f32.mrb[25].mxu0 }
 0x329   : > { %v3608_v6 = vadd.f32 %v3607_v5, %v3606_v4  ;;  %v3609_v7 = vpop.f32.mrb[26].mxu0 }
 0x32a   : > { %v3610_v8 = vpop.f32.mrb[27].mxu0 }
 0x32b   : > { %v3611_v9 = vadd.f32 %v3610_v8, %v3609_v7 }
 0x32d   : > { %v1367_v24 = vpack.c.bf16 %v3611_v9, %v3608_v6 }
 0x32f   : > { %v3612_v10 = vpop.f32.mrb[28].mxu0  ;;  %4022 = vmatprep.mubr.bf16.mxu1 %v1367_v24 }
 0x330   : > { %v3613_v11 = vpop.f32.mrb[29].mxu0 }
 0x331   : > { %v3614_v12 = vadd.f32 %v3613_v11, %v3612_v10  ;;  %v3615_v13 = vpop.f32.mrb[30].mxu0 }
 0x332   : > { %v3616_v14 = vpop.f32.mrb[31].mxu0 }
 0x333   : > { %v3617_v15 = vadd.f32 %v3616_v14, %v3615_v13 }
 0x335   : > { %v1368_v16 = vpack.c.bf16 %v3617_v15, %v3614_v12 }
 0x337   : > { %v3618_v17 = vpop.f32.mrb[32].mxu0  ;;  %4023 = vmatmul.mubr.bf16.gmra.mrb[12].mxu1 %v1368_v16 }
 0x338   : > { %v3619_v18 = vpop.f32.mrb[33].mxu0 }
 0x339   : > { %v3620_v19 = vadd.f32 %v3619_v18, %v3618_v17  ;;  %v3621_v20 = vpop.f32.mrb[34].mxu0 }
 0x33a   : > { %v3622_v21 = vpop.f32.mrb[35].mxu0 }
 0x33b   : > { %v3623_v22 = vadd.f32 %v3622_v21, %v3621_v20 }
 0x33d   : > { %v1369_v23 = vpack.c.bf16 %v3623_v22, %v3620_v19 }
 0x33f   : > { %v3624_v25 = vpop.f32.mrb[36].mxu0  ;;  %4026 = vmatprep.mubr.bf16.mxu1 %v1369_v23 }
 0x340   : > { %v3625_v26 = vpop.f32.mrb[37].mxu0 }
 0x341   : > { %v3626_v27 = vadd.f32 %v3625_v26, %v3624_v25  ;;  %v3627_v28 = vpop.f32.mrb[38].mxu0 }
 0x342   : > { %v3628_v29 = vpop.f32.mrb[39].mxu0 }
 0x343   : > { %v3629_v30 = vadd.f32 %v3628_v29, %v3627_v28 }
 0x345   : > { %v1370_v31 = vpack.c.bf16 %v3629_v30, %v3626_v27 }
 0x347   : > { %v3630_v32 = vpop.f32.mrb[40].mxu0  ;;  %4027 = vmatmul.mubr.bf16.gmra.mrb[16].mxu1 %v1370_v31 }
 0x348   : > { %v3631_v33 = vpop.f32.mrb[41].mxu0 }
 0x349   : > { %v3632_v34 = vadd.f32 %v3631_v33, %v3630_v32  ;;  %v3633_v35 = vpop.f32.mrb[42].mxu0 }
 0x34a   : > { %v3634_v36 = vpop.f32.mrb[43].mxu0 }
 0x34b   : > { %v3635_v37 = vadd.f32 %v3634_v36, %v3633_v35 }
 0x34d   : > { %v1371_v38 = vpack.c.bf16 %v3635_v37, %v3632_v34 }
 0x34f   : > { %v3636_v39 = vpop.f32.mrb[44].mxu0  ;;  %4030 = vmatprep.mubr.bf16.mxu1 %v1371_v38 }
 0x350   : > { %v3637_v40 = vpop.f32.mrb[45].mxu0 }
 0x351   : > { %v3638_v41 = vadd.f32 %v3637_v40, %v3636_v39  ;;  %v3639_v42 = vpop.f32.mrb[46].mxu0 }
 0x352   : > { %v3640_v43 = vpop.f32.mrb[47].mxu0 }
 0x353   : > { %v3641_v44 = vadd.f32 %v3640_v43, %v3639_v42 }
 0x355   : > { %v1372_v45 = vpack.c.bf16 %v3641_v44, %v3638_v41 }
 0x357   : > { %v3642_v46 = vpop.f32.mrb[48].mxu0  ;;  %4031 = vmatmul.mubr.bf16.gmra.mrb[20].mxu1 %v1372_v45 }
 0x358   : > { %v3643_v47 = vpop.f32.mrb[49].mxu0 }
 0x359   : > { %v3644_v48 = vadd.f32 %v3643_v47, %v3642_v46  ;;  %v3645_v49 = vpop.f32.mrb[50].mxu0 }
 0x35a   : > { %v3646_v50 = vpop.f32.mrb[51].mxu0 }
 0x35b   : > { %v3647_v51 = vadd.f32 %v3646_v50, %v3645_v49 }
 0x35d   : > { %v1373_v52 = vpack.c.bf16 %v3647_v51, %v3644_v48 }
 0x35f   : > { %v3648_v53 = vpop.f32.mrb[52].mxu0  ;;  %4034 = vmatprep.mubr.bf16.mxu1 %v1373_v52 }
 0x360   : > { %v3649_v54 = vpop.f32.mrb[53].mxu0 }
 0x361   : > { %v3650_v55 = vadd.f32 %v3649_v54, %v3648_v53  ;;  %v3651_v56 = vpop.f32.mrb[54].mxu0 }
 0x362   : > { %v3652_v57 = vpop.f32.mrb[55].mxu0 }
 0x363   : > { %v3653_v58 = vadd.f32 %v3652_v57, %v3651_v56 }
 0x365   : > { %v1374_v59 = vpack.c.bf16 %v3653_v58, %v3650_v55 }
 0x367   : > { %v3654_v60 = vpop.f32.mrb[56].mxu0  ;;  %4035 = vmatmul.mubr.bf16.gmra.mrb[24].mxu1 %v1374_v59 }
 0x368   : > { %v3655_v61 = vpop.f32.mrb[57].mxu0 }
 0x369   : > { %v3656_v62 = vadd.f32 %v3655_v61, %v3654_v60  ;;  %v3657_v63 = vpop.f32.mrb[58].mxu0 }
 0x36a   : > { %v3658_v0 = vpop.f32.mrb[59].mxu0 }
 0x36b   : > { %v3659_v1 = vadd.f32 %v3658_v0, %v3657_v63 }
 0x36d   : > { %v1375_v2 = vpack.c.bf16 %v3659_v1, %v3656_v62 }
 0x36f   : > { %v3660_v3 = vpop.f32.mrb[60].mxu0  ;;  %4038 = vmatprep.mubr.bf16.mxu1 %v1375_v2 }
 0x370   : > { %v3661_v4 = vpop.f32.mrb[61].mxu0 }
 0x371   : > { %v3662_v5 = vadd.f32 %v3661_v4, %v3660_v3  ;;  %v3663_v6 = vpop.f32.mrb[62].mxu0 }
 0x372   : > { %v3664_v7 = vpop.f32.mrb[63].mxu0 }
 0x373   : > { %v3665_v8 = vadd.f32 %v3664_v7, %v3663_v6 }
 0x375   : > { %v1376_v9 = vpack.c.bf16 %v3665_v8, %v3662_v5 }
 0x377   : > { %4039 = vmatmul.mubr.bf16.gmra.mrb[28].mxu1 %v1376_v9 }
 0x3da   : > { %v4012_v24 = vpop.f32.mrb[0].mxu1 }
 0x3db   : > { %v1720_v10 = vpop.f32.mrb[1].mxu1  ;;  %v1849_v12 = vmax.f32 %v4012_v24, 0.0 }
 0x3dc   : > { %v4013_v11 = vpop.f32.mrb[2].mxu1  ;;  %v1847_v15 = vmax.f32 %v1720_v10, 0.0 }
 0x3dd   : > { %v1850_v13 = vmax.f32 %v4013_v11, 0.0  ;;  %v1723_v14 = vpop.f32.mrb[3].mxu1 }
 0x3de   : > { %v1848_v16 = vmax.f32 %v1723_v14, 0.0 }
 0x3df   : > { %v1880_v17 = vpack.c.bf16 %v1850_v13, %v1849_v12 }
 0x3e0   : > { %v1879_v18 = vpack.c.bf16 %v1848_v16, %v1847_v15 }
 0x3e1   : > { %1898 = vst [vmem:[#allocation3 + $0x8] sm:$0xff] %v1880_v17 }
 0x3e2   : > { %1897 = vst [vmem:[#allocation3] sm:$0xff] %v1879_v18 }
 0x3ea   : > { %v4016_v19 = vpop.f32.mrb[4].mxu1 }
 0x3eb   : > { %v1736_v20 = vpop.f32.mrb[5].mxu1  ;;  %v1853_v22 = vmax.f32 %v4016_v19, 0.0 }
 0x3ec   : > { %v4017_v21 = vpop.f32.mrb[6].mxu1  ;;  %v1851_v26 = vmax.f32 %v1736_v20, 0.0 }
 0x3ed   : > { %v1854_v23 = vmax.f32 %v4017_v21, 0.0  ;;  %v1739_v25 = vpop.f32.mrb[7].mxu1 }
 0x3ee   : > { %v1852_v27 = vmax.f32 %v1739_v25, 0.0 }
 0x3ef   : > { %v1882_v28 = vpack.c.bf16 %v1854_v23, %v1853_v22 }
 0x3f0   : > { %v1881_v29 = vpack.c.bf16 %v1852_v27, %v1851_v26 }
 0x3f1   : > { %1900 = vst [vmem:[#allocation3 + $0x18] sm:$0xff] %v1882_v28 }
 0x3f2   : > { %1899 = vst [vmem:[#allocation3 + $0x10] sm:$0xff] %v1881_v29 }
 0x3fa   : > { %v4020_v30 = vpop.f32.mrb[8].mxu1 }
 0x3fb   : > { %v1752_v31 = vpop.f32.mrb[9].mxu1  ;;  %v1857_v33 = vmax.f32 %v4020_v30, 0.0 }
 0x3fc   : > { %v4021_v32 = vpop.f32.mrb[10].mxu1  ;;  %v1855_v36 = vmax.f32 %v1752_v31, 0.0 }
 0x3fd   : > { %v1858_v34 = vmax.f32 %v4021_v32, 0.0  ;;  %v1755_v35 = vpop.f32.mrb[11].mxu1 }
 0x3fe   : > { %v1856_v37 = vmax.f32 %v1755_v35, 0.0 }
 0x3ff   : > { %v1884_v38 = vpack.c.bf16 %v1858_v34, %v1857_v33 }
 0x400   : > { %v1883_v39 = vpack.c.bf16 %v1856_v37, %v1855_v36 }
 0x401   : > { %1902 = vst [vmem:[#allocation3 + $0x28] sm:$0xff] %v1884_v38 }
 0x402   : > { %1901 = vst [vmem:[#allocation3 + $0x20] sm:$0xff] %v1883_v39 }
 0x40a   : > { %v4024_v40 = vpop.f32.mrb[12].mxu1 }
 0x40b   : > { %v1768_v41 = vpop.f32.mrb[13].mxu1  ;;  %v1861_v43 = vmax.f32 %v4024_v40, 0.0 }
 0x40c   : > { %v4025_v42 = vpop.f32.mrb[14].mxu1  ;;  %v1859_v46 = vmax.f32 %v1768_v41, 0.0 }
 0x40d   : > { %v1862_v44 = vmax.f32 %v4025_v42, 0.0  ;;  %v1771_v45 = vpop.f32.mrb[15].mxu1 }
 0x40e   : > { %v1860_v47 = vmax.f32 %v1771_v45, 0.0 }
 0x40f   : > { %v1886_v48 = vpack.c.bf16 %v1862_v44, %v1861_v43 }
 0x410   : > { %v1885_v49 = vpack.c.bf16 %v1860_v47, %v1859_v46 }
 0x411   : > { %1904 = vst [vmem:[#allocation3 + $0x38] sm:$0xff] %v1886_v48 }
 0x412   : > { %1903 = vst [vmem:[#allocation3 + $0x30] sm:$0xff] %v1885_v49 }
 0x41a   : > { %v4028_v50 = vpop.f32.mrb[16].mxu1 }
 0x41b   : > { %v1784_v51 = vpop.f32.mrb[17].mxu1  ;;  %v1865_v53 = vmax.f32 %v4028_v50, 0.0 }
 0x41c   : > { %v4029_v52 = vpop.f32.mrb[18].mxu1  ;;  %v1863_v56 = vmax.f32 %v1784_v51, 0.0 }
 0x41d   : > { %v1866_v54 = vmax.f32 %v4029_v52, 0.0  ;;  %v1787_v55 = vpop.f32.mrb[19].mxu1 }
 0x41e   : > { %v1864_v57 = vmax.f32 %v1787_v55, 0.0 }
 0x41f   : > { %v1888_v58 = vpack.c.bf16 %v1866_v54, %v1865_v53 }
 0x420   : > { %v1887_v59 = vpack.c.bf16 %v1864_v57, %v1863_v56 }
 0x421   : > { %1906 = vst [vmem:[#allocation3 + $0x48] sm:$0xff] %v1888_v58 }
 0x422   : > { %1905 = vst [vmem:[#allocation3 + $0x40] sm:$0xff] %v1887_v59 }
 0x42a   : > { %v4032_v60 = vpop.f32.mrb[20].mxu1 }
 0x42b   : > { %v1800_v61 = vpop.f32.mrb[21].mxu1  ;;  %v1869_v63 = vmax.f32 %v4032_v60, 0.0 }
 0x42c   : > { %v4033_v62 = vpop.f32.mrb[22].mxu1  ;;  %v1867_v2 = vmax.f32 %v1800_v61, 0.0 }
 0x42d   : > { %v1870_v0 = vmax.f32 %v4033_v62, 0.0  ;;  %v1803_v1 = vpop.f32.mrb[23].mxu1 }
 0x42e   : > { %v1868_v3 = vmax.f32 %v1803_v1, 0.0 }
 0x42f   : > { %v1890_v4 = vpack.c.bf16 %v1870_v0, %v1869_v63 }
 0x430   : > { %v1889_v5 = vpack.c.bf16 %v1868_v3, %v1867_v2 }
 0x431   : > { %1908 = vst [vmem:[#allocation3 + $0x58] sm:$0xff] %v1890_v4 }
 0x432   : > { %1907 = vst [vmem:[#allocation3 + $0x50] sm:$0xff] %v1889_v5 }
 0x43a   : > { %v4036_v6 = vpop.f32.mrb[24].mxu1 }
 0x43b   : > { %v1816_v7 = vpop.f32.mrb[25].mxu1  ;;  %v1873_v9 = vmax.f32 %v4036_v6, 0.0 }
 0x43c   : > { %v4037_v8 = vpop.f32.mrb[26].mxu1  ;;  %v1871_v11 = vmax.f32 %v1816_v7, 0.0 }
 0x43d   : > { %v1874_v24 = vmax.f32 %v4037_v8, 0.0  ;;  %v1819_v10 = vpop.f32.mrb[27].mxu1 }
 0x43e   : > { %v1872_v12 = vmax.f32 %v1819_v10, 0.0 }
 0x43f   : > { %v1892_v13 = vpack.c.bf16 %v1874_v24, %v1873_v9 }
 0x440   : > { %v1891_v14 = vpack.c.bf16 %v1872_v12, %v1871_v11 }
 0x441   : > { %1910 = vst [vmem:[#allocation3 + $0x68] sm:$0xff] %v1892_v13 }
 0x442   : > { %1909 = vst [vmem:[#allocation3 + $0x60] sm:$0xff] %v1891_v14 }
 0x44a   : > { %v4040_v15 = vpop.f32.mrb[28].mxu1 }
 0x44b   : > { %v1832_v16 = vpop.f32.mrb[29].mxu1  ;;  %v1877_v18 = vmax.f32 %v4040_v15, 0.0 }
 0x44c   : > { %v4041_v17 = vpop.f32.mrb[30].mxu1  ;;  %v1875_v21 = vmax.f32 %v1832_v16, 0.0 }
 0x44d   : > { %v1878_v19 = vmax.f32 %v4041_v17, 0.0  ;;  %v1835_v20 = vpop.f32.mrb[31].mxu1 }
 0x44e   : > { %v1876_v22 = vmax.f32 %v1835_v20, 0.0 }
 0x44f   : > { %v1894_v23 = vpack.c.bf16 %v1878_v19, %v1877_v18 }
 0x450   : > { %v1893_v25 = vpack.c.bf16 %v1876_v22, %v1875_v21 }
 0x451   : > { %1912 = vst [vmem:[#allocation3 + $0x78] sm:$0xff] %v1894_v23 }
 0x452   : > { %1911 = vst [vmem:[#allocation3 + $0x70] sm:$0xff] %v1893_v25 }
 0x453 PF: > { %p1913_p11 = scmp.eq.s32.totalorder %s5427_s23, 1 }
 0x455   : > { %p1914_p9 = pnand %p1913_p11, %p968_p2 }
 0x456   : > { %v1963_v26 = vld [vmem:[#allocation3 + $0x40] sm:$0xff] (!%p1914_p9)  ;;  %v1964_v28 = vld [vmem:[#allocation3 + $0x48] sm:$0xff] (!%p1914_p9)  ;;  %v1965_v30 = vld [vmem:[#allocation3 + $0x50] sm:$0xff] (!%p1914_p9) }
 0x457   : > { %1917 = sbr.rel (%p1914_p9) target bundleno = 1702 (0x6a6), region = 88  ;;  %v1955_v27 = vld [vmem:[#allocation3] sm:$0xff] (!%p1914_p9)  ;;  %3714 = vmatprep.subr.bf16.mxu0 (!%p1914_p9), %v1963_v26  ;;  %v1956_v29 = vld [vmem:[#allocation3 + $0x8] sm:$0xff] (!%p1914_p9)  ;;  %v1957_v32 = vld [vmem:[#allocation3 + $0x10] sm:$0xff] (!%p1914_p9) }
 0x458   : > { %3715 = vmatpush3.bf16.msra.mxu0 (!%p1914_p9), %v1955_v27  ;;  %v4491_v31 = vld [vmem:[#allocation10 + $0x4] ss:$8 sps:$4 sm:$0xff] (!%p1914_p9)   ;;  %v1966_v33 = vld [vmem:[#allocation3 + $0x58] sm:$0xff] (!%p1914_p9)  ;;  %v1961_v40 = vld [vmem:[#allocation3 + $0x30] sm:$0xff] (!%p1914_p9) }
 0x459   : > { %3716 = vmatprep.subr.bf16.mxu0 (!%p1914_p9), %v1964_v28  ;;  %2163 = vmatprep.mubr.bf16.mxu0 (!%p1914_p9), %v4491_v31  ;;  %v1958_v34 = vld [vmem:[#allocation3 + $0x18] sm:$0xff] (!%p1914_p9)  ;;  %v1967_v35 = vld [vmem:[#allocation3 + $0x60] sm:$0xff] (!%p1914_p9)  ;;  %v1968_v37 = vld [vmem:[#allocation3 + $0x68] sm:$0xff] (!%p1914_p9) }
 0x45a   : > { %v1959_v36 = vld [vmem:[#allocation3 + $0x20] sm:$0xff] (!%p1914_p9)  ;;  %v1960_v38 = vld [vmem:[#allocation3 + $0x28] sm:$0xff] (!%p1914_p9)  ;;  %v1969_v39 = vld [vmem:[#allocation3 + $0x70] sm:$0xff] (!%p1914_p9) }
 0x45b   : > { %v1970_v41 = vld [vmem:[#allocation3 + $0x78] sm:$0xff] (!%p1914_p9)  ;;  %v4537_v43 = vld [vmem:[%s5163_s16] sm:$0xff] (!%p1914_p9)   ;;  %v4538_v44 = vld [vmem:[%s5163_s16 + $0x8] sm:$0xff] (!%p1914_p9)  }
 0x45c   : > { %3717 = vmatpush3.bf16.msra.mxu0 (!%p1914_p9), %v1956_v29  ;;  %v1962_v42 = vld [vmem:[#allocation3 + $0x38] sm:$0xff] (!%p1914_p9)  ;;  %v4489_v45 = vld [vmem:[#allocation10] ss:$8 sps:$4 sm:$0xff] (!%p1914_p9)   ;;  %4042 = vmatprep.subr.bf16.mxu1 (!%p1914_p9), %v4537_v43  ;;  %v4539_v47 = vld [vmem:[%s5163_s16 + $0x10] sm:$0xff] (!%p1914_p9)  }
 0x45d   : > { %3718 = vmatprep.subr.bf16.mxu0 (!%p1914_p9), %v1965_v30  ;;  %v4492_v46 = vld [vmem:[#allocation10 + $0x14] ss:$8 sps:$4 sm:$0xff] (!%p1914_p9)   ;;  %4043 = vmatpush3.bf16.msra.mxu1 (!%p1914_p9), %v4537_v43  ;;  %v2328_v48 = vld [vmem:[#allocation4] sm:$0xff] (!%p1914_p9)  ;;  %v4494_v50 = vld [vmem:[#allocation10 + $0x10] ss:$8 sps:$4 sm:$0xff] (!%p1914_p9)  }
 0x45e   : > { %4044 = vmatprep.subr.bf16.mxu1 %v4538_v44  ;;  %v4540_v49 = vld [vmem:[%s5163_s16 + $0x18] sm:$0xff]   ;;  %4058 = vmatprep.mubr.bf16.mxu1 %v2328_v48  ;;  %v4495_v51 = vld [vmem:[#allocation10 + $0x24] ss:$8 sps:$4 sm:$0xff]   ;;  %v4497_v53 = vld [vmem:[#allocation10 + $0x20] ss:$8 sps:$4 sm:$0xff]  }
 0x45f   : > { %v4541_v52 = vld [vmem:[%s5163_s16 + $0x20] sm:$0xff]   ;;  %v4542_v54 = vld [vmem:[%s5163_s16 + $0x28] sm:$0xff]   ;;  %v4498_v55 = vld [vmem:[#allocation10 + $0x34] ss:$8 sps:$4 sm:$0xff]  }
 0x460   : > { %3719 = vmatpush3.bf16.msra.mxu0 %v1957_v32  ;;  %v4543_v56 = vld [vmem:[%s5163_s16 + $0x30] sm:$0xff]   ;;  %v4544_v57 = vld [vmem:[%s5163_s16 + $0x38] sm:$0xff]   ;;  %v4501_v59 = vld [vmem:[#allocation10 + $0x44] ss:$8 sps:$4 sm:$0xff]  }
 0x461   : > { %3720 = vmatprep.subr.bf16.mxu0 %v1966_v33  ;;  %4045 = vmatpush3.bf16.msra.mxu1 %v4538_v44  ;;  %v4500_v58 = vld [vmem:[#allocation10 + $0x30] ss:$8 sps:$4 sm:$0xff]   ;;  %v4545_v60 = vld [vmem:[%s5157_s21] sm:$0xff]   ;;  %v2329_v61 = vld [vmem:[#allocation4 + $0x8] sm:$0xff] }
 0x462   : > { %4046 = vmatprep.subr.bf16.mxu1 %v4539_v47  ;;  %v2330_v62 = vld [vmem:[#allocation4 + $0x10] sm:$0xff]  ;;  %v4546_v63 = vld [vmem:[%s5157_s21 + $0x8] sm:$0xff]   ;;  %v2331_v3 = vld [vmem:[#allocation4 + $0x18] sm:$0xff] }
 0x463   : > { %v4503_v0 = vld [vmem:[#allocation10 + $0x40] ss:$8 sps:$4 sm:$0xff]   ;;  %v4504_v1 = vld [vmem:[#allocation10 + $0x54] ss:$8 sps:$4 sm:$0xff]   ;;  %v4506_v6 = vld [vmem:[#allocation10 + $0x50] ss:$8 sps:$4 sm:$0xff]  }
 0x464   : > { %3721 = vmatpush3.bf16.msra.mxu0 %v1958_v34  ;;  %v4547_v2 = vld [vmem:[%s5157_s21 + $0x10] sm:$0xff]   ;;  %v2332_v4 = vld [vmem:[#allocation4 + $0x20] sm:$0xff]  ;;  %v4548_v5 = vld [vmem:[%s5157_s21 + $0x18] sm:$0xff]  }
 0x465   : > { %3722 = vmatprep.subr.bf16.mxu0 %v1967_v35  ;;  %4047 = vmatpush3.bf16.msra.mxu1 %v4539_v47  ;;  %v4507_v7 = vld [vmem:[#allocation10 + $0x64] ss:$8 sps:$4 sm:$0xff]   ;;  %v2334_v9 = vld [vmem:[#allocation4 + $0x30] sm:$0xff]  ;;  %v4509_v24 = vld [vmem:[#allocation10 + $0x60] ss:$8 sps:$4 sm:$0xff]  }
 0x466   : > { %4048 = vmatprep.subr.bf16.mxu1 %v4540_v49  ;;  %v2333_v8 = vld [vmem:[#allocation4 + $0x28] sm:$0xff]  ;;  %v4510_v10 = vld [vmem:[#allocation10 + $0x74] ss:$8 sps:$4 sm:$0xff]   ;;  %v2336_v12 = vld [vmem:[#allocation4 + $0x40] sm:$0xff] }
 0x467   : > { %v2335_v11 = vld [vmem:[#allocation4 + $0x38] sm:$0xff]  ;;  %v4513_v14 = vld [vmem:[#allocation10 + $0x84] ss:$8 sps:$4 sm:$0xff]   ;;  %v2338_v16 = vld [vmem:[#allocation4 + $0x50] sm:$0xff] }
 0x468   : > { %3723 = vmatpush3.bf16.msra.mxu0 %v1959_v36  ;;  %v4512_v13 = vld [vmem:[#allocation10 + $0x70] ss:$8 sps:$4 sm:$0xff]   ;;  %v2337_v15 = vld [vmem:[#allocation4 + $0x48] sm:$0xff]  ;;  %v4516_v18 = vld [vmem:[#allocation10 + $0x94] ss:$8 sps:$4 sm:$0xff]  }
 0x469   : > { %3724 = vmatprep.subr.bf16.mxu0 %v1968_v37  ;;  %4049 = vmatpush3.bf16.msra.mxu1 %v4540_v49  ;;  %v4515_v17 = vld [vmem:[#allocation10 + $0x80] ss:$8 sps:$4 sm:$0xff]   ;;  %v2339_v19 = vld [vmem:[#allocation4 + $0x58] sm:$0xff]  ;;  %v4519_v22 = vld [vmem:[#allocation10 + $0xa4] ss:$8 sps:$4 sm:$0xff]  }
 0x46a   : > { %4050 = vmatprep.subr.bf16.mxu1 %v4541_v52  ;;  %v2340_v20 = vld [vmem:[#allocation4 + $0x60] sm:$0xff]  ;;  %v4518_v21 = vld [vmem:[#allocation10 + $0x90] ss:$8 sps:$4 sm:$0xff]   ;;  %v2341_v23 = vld [vmem:[#allocation4 + $0x68] sm:$0xff] }
 0x46b   : > { %v4521_v25 = vld [vmem:[#allocation10 + $0xa0] ss:$8 sps:$4 sm:$0xff]   ;;  %v4522_v26 = vld [vmem:[#allocation10 + $0xb4] ss:$8 sps:$4 sm:$0xff]   ;;  %v4524_v28 = vld [vmem:[#allocation10 + $0xb0] ss:$8 sps:$4 sm:$0xff]  }
 0x46c   : > { %3725 = vmatpush3.bf16.msra.mxu0 %v1960_v38  ;;  %v4549_v27 = vld [vmem:[%s5157_s21 + $0x20] sm:$0xff]   ;;  %v4550_v30 = vld [vmem:[%s5157_s21 + $0x28] sm:$0xff]   ;;  %v2342_v31 = vld [vmem:[#allocation4 + $0x70] sm:$0xff] }
 0x46d   : > { %3726 = vmatprep.subr.bf16.mxu0 %v1969_v39  ;;  %4051 = vmatpush3.bf16.msra.mxu1 %v4541_v52  ;;  %v4525_v29 = vld [vmem:[#allocation10 + $0xc4] ss:$8 sps:$4 sm:$0xff]   ;;  %v2343_v32 = vld [vmem:[#allocation4 + $0x78] sm:$0xff]  ;;  %v4551_v33 = vld [vmem:[%s5157_s21 + $0x30] sm:$0xff]  }
 0x46e   : > { %4052 = vmatprep.subr.bf16.mxu1 %v4542_v54  ;;  %v4527_v34 = vld [vmem:[#allocation10 + $0xc0] ss:$8 sps:$4 sm:$0xff]   ;;  %v4528_v35 = vld [vmem:[#allocation10 + $0xd4] ss:$8 sps:$4 sm:$0xff]   ;;  %v4530_v37 = vld [vmem:[#allocation10 + $0xd0] ss:$8 sps:$4 sm:$0xff]  }
 0x46f   : > { %v4552_v36 = vld [vmem:[%s5157_s21 + $0x38] sm:$0xff]   ;;  %v4531_v38 = vld [vmem:[#allocation10 + $0xe4] ss:$8 sps:$4 sm:$0xff]   ;;  %v4533_v39 = vld [vmem:[#allocation10 + $0xe0] ss:$8 sps:$4 sm:$0xff]  }
 0x470   : > { %3727 = vmatpush3.bf16.msra.mxu0 %v1961_v40  ;;  %v4534_v40 = vld [vmem:[#allocation10 + $0xf4] ss:$8 sps:$4 sm:$0xff]  }
 0x471   : > { %3728 = vmatprep.subr.bf16.mxu0 %v1970_v41  ;;  %4053 = vmatpush3.bf16.msra.mxu1 %v4542_v54  ;;  %v4536_v41 = vld [vmem:[#allocation10 + $0xf0] ss:$8 sps:$4 sm:$0xff]  }
 0x472   : > { %4054 = vmatprep.subr.bf16.mxu1 %v4543_v56 }
 0x474   : > { %3729 = vmatpush3.bf16.msra.mxu0 %v1962_v42 }
 0x475   : > { %4055 = vmatpush3.bf16.msra.mxu1 %v4543_v56 }
 0x476   : > { %4056 = vmatprep.subr.bf16.mxu1 %v4544_v57 }
 0x477   : > { %2164 = vmatmul.mubr.bf16.vlgmr.msra.gmra.mrb[0].mxu0 %v4489_v45 }
 0x478   : > { %2171 = vmatprep.mubr.bf16.mxu0 %v4492_v46 }
 0x479   : > { %4057 = vmatpush3.bf16.msra.mxu1 %v4544_v57 }
 0x47a   : > { %4090 = vmatprep.subr.bf16.mxu1 %v4545_v60 }
 0x47c   : > { %4059 = vmatmul.mubr.bf16.vlgmr.msra.gmra.mrb[0].mxu1 %v2329_v61 }
 0x47d   : > { %4062 = vmatprep.mubr.bf16.mxu1 %v2330_v62  ;;  %4091 = vmatpush3.bf16.msra.mxu1 %v4545_v60 }
 0x47e   : > { %4092 = vmatprep.subr.bf16.mxu1 %v4546_v63 }
 0x47f   : > { %2172 = vmatmul.mubr.bf16.gmra.mrb[4].mxu0 %v4494_v50 }
 0x480   : > { %2179 = vmatprep.mubr.bf16.mxu0 %v4495_v51 }
 0x481   : > { %4093 = vmatpush3.bf16.msra.mxu1 %v4546_v63 }
 0x482   : > { %4094 = vmatprep.subr.bf16.mxu1 %v4547_v2 }
 0x484   : > { %4063 = vmatmul.mubr.bf16.gmra.mrb[4].mxu1 %v2331_v3 }
 0x485   : > { %4066 = vmatprep.mubr.bf16.mxu1 %v2332_v4  ;;  %4095 = vmatpush3.bf16.msra.mxu1 %v4547_v2 }
 0x486   : > { %4096 = vmatprep.subr.bf16.mxu1 %v4548_v5 }
 0x487   : > { %2180 = vmatmul.mubr.bf16.gmra.mrb[8].mxu0 %v4497_v53 }
 0x488   : > { %2187 = vmatprep.mubr.bf16.mxu0 %v4498_v55 }
 0x489   : > { %4097 = vmatpush3.bf16.msra.mxu1 %v4548_v5 }
 0x48a   : > { %4098 = vmatprep.subr.bf16.mxu1 %v4549_v27 }
 0x48c   : > { %4067 = vmatmul.mubr.bf16.gmra.mrb[8].mxu1 %v2333_v8 }
 0x48d   : > { %4070 = vmatprep.mubr.bf16.mxu1 %v2334_v9  ;;  %4099 = vmatpush3.bf16.msra.mxu1 %v4549_v27 }
 0x48e   : > { %4100 = vmatprep.subr.bf16.mxu1 %v4550_v30 }
 0x48f   : > { %2188 = vmatmul.mubr.bf16.gmra.mrb[12].mxu0 %v4500_v58 }
 0x490   : > { %2195 = vmatprep.mubr.bf16.mxu0 %v4501_v59 }
 0x491   : > { %4101 = vmatpush3.bf16.msra.mxu1 %v4550_v30 }
 0x492   : > { %4102 = vmatprep.subr.bf16.mxu1 %v4551_v33 }
 0x494   : > { %4071 = vmatmul.mubr.bf16.gmra.mrb[12].mxu1 %v2335_v11 }
 0x495   : > { %4074 = vmatprep.mubr.bf16.mxu1 %v2336_v12  ;;  %4103 = vmatpush3.bf16.msra.mxu1 %v4551_v33 }
 0x496   : > { %4104 = vmatprep.subr.bf16.mxu1 %v4552_v36 }
 0x497   : > { %2196 = vmatmul.mubr.bf16.gmra.mrb[16].mxu0 %v4503_v0 }
 0x498   : > { %2203 = vmatprep.mubr.bf16.mxu0 %v4504_v1 }
 0x499   : > { %4105 = vmatpush3.bf16.msra.mxu1 %v4552_v36 }
 0x49c   : > { %4075 = vmatmul.mubr.bf16.gmra.mrb[16].mxu1 %v2337_v15 }
 0x49d   : > { %4078 = vmatprep.mubr.bf16.mxu1 %v2338_v16 }
 0x49f   : > { %2204 = vmatmul.mubr.bf16.gmra.mrb[20].mxu0 %v4506_v6 }
 0x4a0   : > { %2211 = vmatprep.mubr.bf16.mxu0 %v4507_v7 }
 0x4a4   : > { %4079 = vmatmul.mubr.bf16.gmra.mrb[20].mxu1 %v2339_v19 }
 0x4a5   : > { %4082 = vmatprep.mubr.bf16.mxu1 %v2340_v20 }
 0x4a7   : > { %2212 = vmatmul.mubr.bf16.gmra.mrb[24].mxu0 %v4509_v24 }
 0x4a8   : > { %2219 = vmatprep.mubr.bf16.mxu0 %v4510_v10 }
 0x4ac   : > { %4083 = vmatmul.mubr.bf16.gmra.mrb[24].mxu1 %v2341_v23 }
 0x4ad   : > { %4086 = vmatprep.mubr.bf16.mxu1 %v2342_v31 }
 0x4af   : > { %2220 = vmatmul.mubr.bf16.gmra.mrb[28].mxu0 %v4512_v13 }
 0x4b0   : > { %2227 = vmatprep.mubr.bf16.mxu0 %v4513_v14 }
 0x4b4   : > { %4087 = vmatmul.mubr.bf16.gmra.mrb[28].mxu1 %v2343_v32 }
 0x4b7   : > { %2228 = vmatmul.mubr.bf16.gmra.mrb[32].mxu0 %v4515_v17 }
 0x4b8   : > { %2235 = vmatprep.mubr.bf16.mxu0 %v4516_v18 }
 0x4bf   : > { %2236 = vmatmul.mubr.bf16.gmra.mrb[36].mxu0 %v4518_v21 }
 0x4c0   : > { %2243 = vmatprep.mubr.bf16.mxu0 %v4519_v22 }
 0x4c7   : > { %2244 = vmatmul.mubr.bf16.gmra.mrb[40].mxu0 %v4521_v25 }
 0x4c8   : > { %2251 = vmatprep.mubr.bf16.mxu0 %v4522_v26 }
 0x4cf   : > { %2252 = vmatmul.mubr.bf16.gmra.mrb[44].mxu0 %v4524_v28 }
 0x4d0   : > { %2259 = vmatprep.mubr.bf16.mxu0 %v4525_v29 }
 0x4d7   : > { %2260 = vmatmul.mubr.bf16.gmra.mrb[48].mxu0 %v4527_v34 }
 0x4d8   : > { %2267 = vmatprep.mubr.bf16.mxu0 %v4528_v35 }
 0x4df   : > { %2268 = vmatmul.mubr.bf16.gmra.mrb[52].mxu0 %v4530_v37 }
 0x4e0   : > { %2275 = vmatprep.mubr.bf16.mxu0 %v4531_v38 }
 0x4e7   : > { %2276 = vmatmul.mubr.bf16.gmra.mrb[56].mxu0 %v4533_v39 }
 0x4e8   : > { %2283 = vmatprep.mubr.bf16.mxu0 %v4534_v40 }
 0x4ef   : > { %2284 = vmatmul.mubr.bf16.gmra.mrb[60].mxu0 %v4536_v41 }
 0x54a   : > { %v3730_v42 = vpop.f32.mrb[0].mxu0 }
 0x54b   : > { %v3731_v43 = vpop.f32.mrb[1].mxu0 }
 0x54c   : > { %v3732_v44 = vadd.f32 %v3731_v43, %v3730_v42  ;;  %v3733_v45 = vpop.f32.mrb[2].mxu0 }
 0x54d   : > { %v3734_v46 = vpop.f32.mrb[3].mxu0 }
 0x54e   : > { %v3735_v47 = vadd.f32 %v3734_v46, %v3733_v45 }
 0x550   : > { %v2292_v48 = vpack.c.bf16 %v3735_v47, %v3732_v44 }
 0x552   : > { %v3736_v49 = vpop.f32.mrb[4].mxu0  ;;  %4106 = vmatprep.mubr.bf16.mxu1 %v2292_v48 }
 0x553   : > { %v3737_v50 = vpop.f32.mrb[5].mxu0 }
 0x554   : > { %v3738_v51 = vadd.f32 %v3737_v50, %v3736_v49  ;;  %v3739_v52 = vpop.f32.mrb[6].mxu0 }
 0x555   : > { %v3740_v53 = vpop.f32.mrb[7].mxu0 }
 0x556   : > { %v3741_v54 = vadd.f32 %v3740_v53, %v3739_v52 }
 0x558   : > { %v2293_v55 = vpack.c.bf16 %v3741_v54, %v3738_v51 }
 0x55a   : > { %v3742_v56 = vpop.f32.mrb[8].mxu0  ;;  %4107 = vmatmul.mubr.bf16.vlgmr.msra.gmra.mrb[0].mxu1 %v2293_v55 }
 0x55b   : > { %v3743_v57 = vpop.f32.mrb[9].mxu0 }
 0x55c   : > { %v3744_v58 = vadd.f32 %v3743_v57, %v3742_v56  ;;  %v3745_v59 = vpop.f32.mrb[10].mxu0 }
 0x55d   : > { %v3746_v60 = vpop.f32.mrb[11].mxu0 }
 0x55e   : > { %v3747_v61 = vadd.f32 %v3746_v60, %v3745_v59 }
 0x560   : > { %v2294_v62 = vpack.c.bf16 %v3747_v61, %v3744_v58 }
 0x562   : > { %v3748_v63 = vpop.f32.mrb[12].mxu0  ;;  %4110 = vmatprep.mubr.bf16.mxu1 %v2294_v62 }
 0x563   : > { %v3749_v0 = vpop.f32.mrb[13].mxu0 }
 0x564   : > { %v3750_v1 = vadd.f32 %v3749_v0, %v3748_v63  ;;  %v3751_v2 = vpop.f32.mrb[14].mxu0 }
 0x565   : > { %v3752_v3 = vpop.f32.mrb[15].mxu0 }
 0x566   : > { %v3753_v4 = vadd.f32 %v3752_v3, %v3751_v2 }
 0x568   : > { %v2295_v5 = vpack.c.bf16 %v3753_v4, %v3750_v1 }
 0x56a   : > { %v3754_v6 = vpop.f32.mrb[16].mxu0  ;;  %4111 = vmatmul.mubr.bf16.gmra.mrb[4].mxu1 %v2295_v5 }
 0x56b   : > { %v3755_v7 = vpop.f32.mrb[17].mxu0 }
 0x56c   : > { %v3756_v8 = vadd.f32 %v3755_v7, %v3754_v6  ;;  %v3757_v9 = vpop.f32.mrb[18].mxu0 }
 0x56d   : > { %v3758_v24 = vpop.f32.mrb[19].mxu0 }
 0x56e   : > { %v3759_v10 = vadd.f32 %v3758_v24, %v3757_v9 }
 0x570   : > { %v2296_v11 = vpack.c.bf16 %v3759_v10, %v3756_v8 }
 0x572   : > { %v3760_v12 = vpop.f32.mrb[20].mxu0  ;;  %4114 = vmatprep.mubr.bf16.mxu1 %v2296_v11 }
 0x573   : > { %v3761_v13 = vpop.f32.mrb[21].mxu0 }
 0x574   : > { %v3762_v14 = vadd.f32 %v3761_v13, %v3760_v12  ;;  %v3763_v15 = vpop.f32.mrb[22].mxu0 }
 0x575   : > { %v3764_v16 = vpop.f32.mrb[23].mxu0 }
 0x576   : > { %v3765_v17 = vadd.f32 %v3764_v16, %v3763_v15 }
 0x578   : > { %v2297_v18 = vpack.c.bf16 %v3765_v17, %v3762_v14 }
 0x57a   : > { %v3766_v19 = vpop.f32.mrb[24].mxu0  ;;  %4115 = vmatmul.mubr.bf16.gmra.mrb[8].mxu1 %v2297_v18 }
 0x57b   : > { %v3767_v20 = vpop.f32.mrb[25].mxu0 }
 0x57c   : > { %v3768_v21 = vadd.f32 %v3767_v20, %v3766_v19  ;;  %v3769_v22 = vpop.f32.mrb[26].mxu0 }
 0x57d   : > { %v3770_v23 = vpop.f32.mrb[27].mxu0 }
 0x57e   : > { %v3771_v25 = vadd.f32 %v3770_v23, %v3769_v22 }
 0x580   : > { %v2298_v26 = vpack.c.bf16 %v3771_v25, %v3768_v21 }
 0x582   : > { %v3772_v27 = vpop.f32.mrb[28].mxu0  ;;  %4118 = vmatprep.mubr.bf16.mxu1 %v2298_v26 }
 0x583   : > { %v3773_v28 = vpop.f32.mrb[29].mxu0 }
 0x584   : > { %v3774_v29 = vadd.f32 %v3773_v28, %v3772_v27  ;;  %v3775_v30 = vpop.f32.mrb[30].mxu0 }
 0x585   : > { %v3776_v31 = vpop.f32.mrb[31].mxu0 }
 0x586   : > { %v3777_v32 = vadd.f32 %v3776_v31, %v3775_v30 }
 0x588   : > { %v2299_v33 = vpack.c.bf16 %v3777_v32, %v3774_v29 }
 0x58a   : > { %v3778_v34 = vpop.f32.mrb[32].mxu0  ;;  %4119 = vmatmul.mubr.bf16.gmra.mrb[12].mxu1 %v2299_v33 }
 0x58b   : > { %v3779_v35 = vpop.f32.mrb[33].mxu0 }
 0x58c   : > { %v3780_v36 = vadd.f32 %v3779_v35, %v3778_v34  ;;  %v3781_v37 = vpop.f32.mrb[34].mxu0 }
 0x58d   : > { %v3782_v38 = vpop.f32.mrb[35].mxu0 }
 0x58e   : > { %v3783_v39 = vadd.f32 %v3782_v38, %v3781_v37 }
 0x590   : > { %v2300_v40 = vpack.c.bf16 %v3783_v39, %v3780_v36 }
 0x592   : > { %v3784_v41 = vpop.f32.mrb[36].mxu0  ;;  %4122 = vmatprep.mubr.bf16.mxu1 %v2300_v40 }
 0x593   : > { %v3785_v42 = vpop.f32.mrb[37].mxu0 }
 0x594   : > { %v3786_v43 = vadd.f32 %v3785_v42, %v3784_v41  ;;  %v3787_v44 = vpop.f32.mrb[38].mxu0 }
 0x595   : > { %v3788_v45 = vpop.f32.mrb[39].mxu0 }
 0x596   : > { %v3789_v46 = vadd.f32 %v3788_v45, %v3787_v44 }
 0x598   : > { %v2301_v47 = vpack.c.bf16 %v3789_v46, %v3786_v43 }
 0x59a   : > { %v3790_v48 = vpop.f32.mrb[40].mxu0  ;;  %4123 = vmatmul.mubr.bf16.gmra.mrb[16].mxu1 %v2301_v47 }
 0x59b   : > { %v3791_v49 = vpop.f32.mrb[41].mxu0 }
 0x59c   : > { %v3792_v50 = vadd.f32 %v3791_v49, %v3790_v48  ;;  %v3793_v51 = vpop.f32.mrb[42].mxu0 }
 0x59d   : > { %v3794_v52 = vpop.f32.mrb[43].mxu0 }
 0x59e   : > { %v3795_v53 = vadd.f32 %v3794_v52, %v3793_v51 }
 0x5a0   : > { %v2302_v54 = vpack.c.bf16 %v3795_v53, %v3792_v50 }
 0x5a2   : > { %v3796_v55 = vpop.f32.mrb[44].mxu0  ;;  %4126 = vmatprep.mubr.bf16.mxu1 %v2302_v54 }
 0x5a3   : > { %v3797_v56 = vpop.f32.mrb[45].mxu0 }
 0x5a4   : > { %v3798_v57 = vadd.f32 %v3797_v56, %v3796_v55  ;;  %v3799_v58 = vpop.f32.mrb[46].mxu0 }
 0x5a5   : > { %v3800_v59 = vpop.f32.mrb[47].mxu0 }
 0x5a6   : > { %v3801_v60 = vadd.f32 %v3800_v59, %v3799_v58 }
 0x5a8   : > { %v2303_v61 = vpack.c.bf16 %v3801_v60, %v3798_v57 }
 0x5aa   : > { %v3802_v62 = vpop.f32.mrb[48].mxu0  ;;  %4127 = vmatmul.mubr.bf16.gmra.mrb[20].mxu1 %v2303_v61 }
 0x5ab   : > { %v3803_v63 = vpop.f32.mrb[49].mxu0 }
 0x5ac   : > { %v3804_v0 = vadd.f32 %v3803_v63, %v3802_v62  ;;  %v3805_v1 = vpop.f32.mrb[50].mxu0 }
 0x5ad   : > { %v3806_v2 = vpop.f32.mrb[51].mxu0 }
 0x5ae   : > { %v3807_v3 = vadd.f32 %v3806_v2, %v3805_v1 }
 0x5b0   : > { %v2304_v4 = vpack.c.bf16 %v3807_v3, %v3804_v0 }
 0x5b2   : > { %v3808_v5 = vpop.f32.mrb[52].mxu0  ;;  %4130 = vmatprep.mubr.bf16.mxu1 %v2304_v4 }
 0x5b3   : > { %v3809_v6 = vpop.f32.mrb[53].mxu0 }
 0x5b4   : > { %v3810_v7 = vadd.f32 %v3809_v6, %v3808_v5  ;;  %v3811_v8 = vpop.f32.mrb[54].mxu0 }
 0x5b5   : > { %v3812_v9 = vpop.f32.mrb[55].mxu0 }
 0x5b6   : > { %v3813_v24 = vadd.f32 %v3812_v9, %v3811_v8 }
 0x5b8   : > { %v2305_v10 = vpack.c.bf16 %v3813_v24, %v3810_v7 }
 0x5ba   : > { %v3814_v11 = vpop.f32.mrb[56].mxu0  ;;  %4131 = vmatmul.mubr.bf16.gmra.mrb[24].mxu1 %v2305_v10 }
 0x5bb   : > { %v3815_v12 = vpop.f32.mrb[57].mxu0 }
 0x5bc   : > { %v3816_v13 = vadd.f32 %v3815_v12, %v3814_v11  ;;  %v3817_v14 = vpop.f32.mrb[58].mxu0 }
 0x5bd   : > { %v3818_v15 = vpop.f32.mrb[59].mxu0 }
 0x5be   : > { %v3819_v16 = vadd.f32 %v3818_v15, %v3817_v14 }
 0x5c0   : > { %v2306_v17 = vpack.c.bf16 %v3819_v16, %v3816_v13 }
 0x5c2   : > { %v3820_v18 = vpop.f32.mrb[60].mxu0  ;;  %4134 = vmatprep.mubr.bf16.mxu1 %v2306_v17 }
 0x5c3   : > { %v3821_v19 = vpop.f32.mrb[61].mxu0 }
 0x5c4   : > { %v3822_v20 = vadd.f32 %v3821_v19, %v3820_v18  ;;  %v3823_v21 = vpop.f32.mrb[62].mxu0 }
 0x5c5   : > { %v3824_v22 = vpop.f32.mrb[63].mxu0 }
 0x5c6   : > { %v3825_v23 = vadd.f32 %v3824_v22, %v3823_v21 }
 0x5c8   : > { %v2307_v25 = vpack.c.bf16 %v3825_v23, %v3822_v20 }
 0x5ca   : > { %4135 = vmatmul.mubr.bf16.gmra.mrb[28].mxu1 %v2307_v25 }
 0x62d   : > { %v4108_v26 = vpop.f32.mrb[0].mxu1 }
 0x62e   : > { %v2651_v27 = vpop.f32.mrb[1].mxu1  ;;  %v2780_v29 = vmax.f32 %v4108_v26, 0.0 }
 0x62f   : > { %v4109_v28 = vpop.f32.mrb[2].mxu1  ;;  %v2778_v32 = vmax.f32 %v2651_v27, 0.0 }
 0x630   : > { %v2781_v30 = vmax.f32 %v4109_v28, 0.0  ;;  %v2654_v31 = vpop.f32.mrb[3].mxu1 }
 0x631   : > { %v2779_v33 = vmax.f32 %v2654_v31, 0.0 }
 0x632   : > { %v2811_v34 = vpack.c.bf16 %v2781_v30, %v2780_v29 }
 0x633   : > { %v2810_v35 = vpack.c.bf16 %v2779_v33, %v2778_v32 }
 0x634   : > { %2829 = vst [vmem:[#allocation2 + $0x8] sm:$0xff] %v2811_v34 }
 0x635   : > { %2828 = vst [vmem:[#allocation2] sm:$0xff] %v2810_v35 }
 0x63d   : > { %v4112_v36 = vpop.f32.mrb[4].mxu1 }
 0x63e   : > { %v2667_v37 = vpop.f32.mrb[5].mxu1  ;;  %v2784_v39 = vmax.f32 %v4112_v36, 0.0 }
 0x63f   : > { %v4113_v38 = vpop.f32.mrb[6].mxu1  ;;  %v2782_v42 = vmax.f32 %v2667_v37, 0.0 }
 0x640   : > { %v2785_v40 = vmax.f32 %v4113_v38, 0.0  ;;  %v2670_v41 = vpop.f32.mrb[7].mxu1 }
 0x641   : > { %v2783_v43 = vmax.f32 %v2670_v41, 0.0 }
 0x642   : > { %v2813_v44 = vpack.c.bf16 %v2785_v40, %v2784_v39 }
 0x643   : > { %v2812_v45 = vpack.c.bf16 %v2783_v43, %v2782_v42 }
 0x644   : > { %2831 = vst [vmem:[#allocation2 + $0x18] sm:$0xff] %v2813_v44 }
 0x645   : > { %2830 = vst [vmem:[#allocation2 + $0x10] sm:$0xff] %v2812_v45 }
 0x64d   : > { %v4116_v46 = vpop.f32.mrb[8].mxu1 }
 0x64e   : > { %v2683_v47 = vpop.f32.mrb[9].mxu1  ;;  %v2788_v49 = vmax.f32 %v4116_v46, 0.0 }
 0x64f   : > { %v4117_v48 = vpop.f32.mrb[10].mxu1  ;;  %v2786_v52 = vmax.f32 %v2683_v47, 0.0 }
 0x650   : > { %v2789_v50 = vmax.f32 %v4117_v48, 0.0  ;;  %v2686_v51 = vpop.f32.mrb[11].mxu1 }
 0x651   : > { %v2787_v53 = vmax.f32 %v2686_v51, 0.0 }
 0x652   : > { %v2815_v54 = vpack.c.bf16 %v2789_v50, %v2788_v49 }
 0x653   : > { %v2814_v55 = vpack.c.bf16 %v2787_v53, %v2786_v52 }
 0x654   : > { %2833 = vst [vmem:[#allocation2 + $0x28] sm:$0xff] %v2815_v54 }
 0x655   : > { %2832 = vst [vmem:[#allocation2 + $0x20] sm:$0xff] %v2814_v55 }
 0x65d   : > { %v4120_v56 = vpop.f32.mrb[12].mxu1 }
 0x65e   : > { %v2699_v57 = vpop.f32.mrb[13].mxu1  ;;  %v2792_v59 = vmax.f32 %v4120_v56, 0.0 }
 0x65f   : > { %v4121_v58 = vpop.f32.mrb[14].mxu1  ;;  %v2790_v62 = vmax.f32 %v2699_v57, 0.0 }
 0x660   : > { %v2793_v60 = vmax.f32 %v4121_v58, 0.0  ;;  %v2702_v61 = vpop.f32.mrb[15].mxu1 }
 0x661   : > { %v2791_v63 = vmax.f32 %v2702_v61, 0.0 }
 0x662   : > { %v2817_v0 = vpack.c.bf16 %v2793_v60, %v2792_v59 }
 0x663   : > { %v2816_v1 = vpack.c.bf16 %v2791_v63, %v2790_v62 }
 0x664   : > { %2835 = vst [vmem:[#allocation2 + $0x38] sm:$0xff] %v2817_v0 }
 0x665   : > { %2834 = vst [vmem:[#allocation2 + $0x30] sm:$0xff] %v2816_v1 }
 0x66d   : > { %v4124_v2 = vpop.f32.mrb[16].mxu1 }
 0x66e   : > { %v2715_v3 = vpop.f32.mrb[17].mxu1  ;;  %v2796_v5 = vmax.f32 %v4124_v2, 0.0 }
 0x66f   : > { %v4125_v4 = vpop.f32.mrb[18].mxu1  ;;  %v2794_v8 = vmax.f32 %v2715_v3, 0.0 }
 0x670   : > { %v2797_v6 = vmax.f32 %v4125_v4, 0.0  ;;  %v2718_v7 = vpop.f32.mrb[19].mxu1 }
 0x671   : > { %v2795_v9 = vmax.f32 %v2718_v7, 0.0 }
 0x672   : > { %v2819_v24 = vpack.c.bf16 %v2797_v6, %v2796_v5 }
 0x673   : > { %v2818_v10 = vpack.c.bf16 %v2795_v9, %v2794_v8 }
 0x674   : > { %2837 = vst [vmem:[#allocation2 + $0x48] sm:$0xff] %v2819_v24 }
 0x675   : > { %2836 = vst [vmem:[#allocation2 + $0x40] sm:$0xff] %v2818_v10 }
 0x67d   : > { %v4128_v11 = vpop.f32.mrb[20].mxu1 }
 0x67e   : > { %v2731_v12 = vpop.f32.mrb[21].mxu1  ;;  %v2800_v14 = vmax.f32 %v4128_v11, 0.0 }
 0x67f   : > { %v4129_v13 = vpop.f32.mrb[22].mxu1  ;;  %v2798_v17 = vmax.f32 %v2731_v12, 0.0 }
 0x680   : > { %v2801_v15 = vmax.f32 %v4129_v13, 0.0  ;;  %v2734_v16 = vpop.f32.mrb[23].mxu1 }
 0x681   : > { %v2799_v18 = vmax.f32 %v2734_v16, 0.0 }
 0x682   : > { %v2821_v19 = vpack.c.bf16 %v2801_v15, %v2800_v14 }
 0x683   : > { %v2820_v20 = vpack.c.bf16 %v2799_v18, %v2798_v17 }
 0x684   : > { %2839 = vst [vmem:[#allocation2 + $0x58] sm:$0xff] %v2821_v19 }
 0x685   : > { %2838 = vst [vmem:[#allocation2 + $0x50] sm:$0xff] %v2820_v20 }
 0x68d   : > { %v4132_v21 = vpop.f32.mrb[24].mxu1 }
 0x68e   : > { %v2747_v22 = vpop.f32.mrb[25].mxu1  ;;  %v2804_v25 = vmax.f32 %v4132_v21, 0.0 }
 0x68f   : > { %v4133_v23 = vpop.f32.mrb[26].mxu1  ;;  %v2802_v28 = vmax.f32 %v2747_v22, 0.0 }
 0x690   : > { %v2805_v26 = vmax.f32 %v4133_v23, 0.0  ;;  %v2750_v27 = vpop.f32.mrb[27].mxu1 }
 0x691   : > { %v2803_v29 = vmax.f32 %v2750_v27, 0.0 }
 0x692   : > { %v2823_v30 = vpack.c.bf16 %v2805_v26, %v2804_v25 }
 0x693   : > { %v2822_v31 = vpack.c.bf16 %v2803_v29, %v2802_v28 }
 0x694   : > { %2841 = vst [vmem:[#allocation2 + $0x68] sm:$0xff] %v2823_v30 }
 0x695   : > { %2840 = vst [vmem:[#allocation2 + $0x60] sm:$0xff] %v2822_v31 }
 0x69d   : > { %v4136_v32 = vpop.f32.mrb[28].mxu1 }
 0x69e   : > { %v2763_v33 = vpop.f32.mrb[29].mxu1  ;;  %v2808_v35 = vmax.f32 %v4136_v32, 0.0 }
 0x69f   : > { %v4137_v34 = vpop.f32.mrb[30].mxu1  ;;  %v2806_v38 = vmax.f32 %v2763_v33, 0.0 }
 0x6a0   : > { %v2809_v36 = vmax.f32 %v4137_v34, 0.0  ;;  %v2766_v37 = vpop.f32.mrb[31].mxu1 }
 0x6a1   : > { %v2807_v39 = vmax.f32 %v2766_v37, 0.0 }
 0x6a2   : > { %v2825_v40 = vpack.c.bf16 %v2809_v36, %v2808_v35 }
 0x6a3   : > { %v2824_v41 = vpack.c.bf16 %v2807_v39, %v2806_v38 }
 0x6a4   : > { %2843 = vst [vmem:[#allocation2 + $0x78] sm:$0xff] %v2825_v40 }
 0x6a5   : > { %2842 = vst [vmem:[#allocation2 + $0x70] sm:$0xff] %v2824_v41 }
 0x6a6 PF: > { %s5403_s22 = sld [smem:[#allocation23_spill]] }
 0x6ac   : > { %p3502_p1 = scmp.ne.s32.totalorder %s5403_s22, 5 }
 0x6ad   : > { %v4553_v42 = vld [vmem:[#allocation14] sm:$0xff] (!%p3502_p1)   ;;  %v4554_v43 = vld [vmem:[#allocation14 + $0x8] sm:$0xff] (!%p3502_p1)   ;;  %v4555_v44 = vld [vmem:[#allocation14 + $0x10] sm:$0xff] (!%p3502_p1)   ;;  %s5404_s15 = sld [smem:[#allocation30_spill]] (!%p3502_p1) }
 0x6ae   : > { %2847 = sbr.rel (%p3502_p1) target bundleno = 1984 (0x7c0), region = 92  ;;  %4138 = vmatprep.subr.bf16.mxu0 (!%p3502_p1), %v4553_v42  ;;  %4266 = vmatprep.subr.bf16.mxu1 (!%p3502_p1), %v4553_v42  ;;  %v4556_v45 = vld [vmem:[#allocation14 + $0x18] sm:$0xff] (!%p3502_p1)   ;;  %v2852_v46 = vld [vmem:[#allocation2] sm:$0xff] (!%p3502_p1)  ;;  %v4558_v49 = vld [vmem:[#allocation14 + $0x28] sm:$0xff] (!%p3502_p1)  }
 0x6af   : > { %4139 = vmatpush3.bf16.msra.mxu0 (!%p3502_p1), %v4553_v42  ;;  %4274 = vmatpush3.bf16.msra.mxu1 (!%p3502_p1), %v4553_v42  ;;  %v2860_v47 = vld [vmem:[#allocation2 + $0x40] sm:$0xff] (!%p3502_p1)  ;;  %v4559_v50 = vld [vmem:[#allocation14 + $0x30] sm:$0xff] (!%p3502_p1)   ;;  %v4560_v51 = vld [vmem:[#allocation14 + $0x38] sm:$0xff] (!%p3502_p1)  }
 0x6b0   : > { %4140 = vmatprep.subr.bf16.mxu0 (!%p3502_p1), %v4554_v43  ;;  %4267 = vmatprep.subr.bf16.mxu1 (!%p3502_p1), %v4554_v43  ;;  %v4557_v48 = vld [vmem:[#allocation14 + $0x20] sm:$0xff] (!%p3502_p1)   ;;  %v2853_v52 = vld [vmem:[#allocation2 + $0x8] sm:$0xff] (!%p3502_p1)  ;;  %v2854_v54 = vld [vmem:[#allocation2 + $0x10] sm:$0xff] (!%p3502_p1) }
 0x6b1   : > { %4154 = vmatprep.mubr.bf16.mxu0 (!%p3502_p1), %v2852_v46  ;;  %4170 = vmatprep.mubr.bf16.mxu1 (!%p3502_p1), %v2860_v47  ;;  %v2861_v53 = vld [vmem:[#allocation2 + $0x48] sm:$0xff] (!%p3502_p1)  ;;  %v2862_v55 = vld [vmem:[#allocation2 + $0x50] sm:$0xff] (!%p3502_p1)  ;;  %v2855_v56 = vld [vmem:[#allocation2 + $0x18] sm:$0xff] (!%p3502_p1) }
 0x6b2   : > { %v2863_v57 = vld [vmem:[#allocation2 + $0x58] sm:$0xff] (!%p3502_p1)  ;;  %v2856_v58 = vld [vmem:[#allocation2 + $0x20] sm:$0xff] (!%p3502_p1)  ;;  %v2857_v60 = vld [vmem:[#allocation2 + $0x28] sm:$0xff] (!%p3502_p1) }
 0x6b3   : > { %4141 = vmatpush3.bf16.msra.mxu0 (!%p3502_p1), %v4554_v43  ;;  %4275 = vmatpush3.bf16.msra.mxu1 (!%p3502_p1), %v4554_v43  ;;  %v2864_v59 = vld [vmem:[#allocation2 + $0x60] sm:$0xff] (!%p3502_p1)  ;;  %v2865_v61 = vld [vmem:[#allocation2 + $0x68] sm:$0xff] (!%p3502_p1)  ;;  %v2858_v62 = vld [vmem:[#allocation2 + $0x30] sm:$0xff] (!%p3502_p1) }
 0x6b4   : > { %4142 = vmatprep.subr.bf16.mxu0 (!%p3502_p1), %v4555_v44  ;;  %4268 = vmatprep.subr.bf16.mxu1 (!%p3502_p1), %v4555_v44  ;;  %v2866_v63 = vld [vmem:[#allocation2 + $0x70] sm:$0xff] (!%p3502_p1)  ;;  %v2859_v0 = vld [vmem:[#allocation2 + $0x38] sm:$0xff] (!%p3502_p1)  ;;  %v5262_v2 = vld [vmem:[%s5404_s15] ss:$0 sm:$0xff] (!%p3502_p1) }
 0x6b5   : > { %v2867_v1 = vld [vmem:[#allocation2 + $0x78] sm:$0xff] }
 0x6b7   : > { %4143 = vmatpush3.bf16.msra.mxu0 %v4555_v44  ;;  %4276 = vmatpush3.bf16.msra.mxu1 %v4555_v44 }
 0x6b8   : > { %4144 = vmatprep.subr.bf16.mxu0 %v4556_v45  ;;  %4269 = vmatprep.subr.bf16.mxu1 %v4556_v45 }
 0x6bb   : > { %4145 = vmatpush3.bf16.msra.mxu0 %v4556_v45  ;;  %4277 = vmatpush3.bf16.msra.mxu1 %v4556_v45 }
 0x6bc   : > { %4146 = vmatprep.subr.bf16.mxu0 %v4557_v48  ;;  %4270 = vmatprep.subr.bf16.mxu1 %v4557_v48 }
 0x6bf   : > { %4147 = vmatpush3.bf16.msra.mxu0 %v4557_v48  ;;  %4278 = vmatpush3.bf16.msra.mxu1 %v4557_v48 }
 0x6c0   : > { %4148 = vmatprep.subr.bf16.mxu0 %v4558_v49  ;;  %4271 = vmatprep.subr.bf16.mxu1 %v4558_v49 }
 0x6c3   : > { %4149 = vmatpush3.bf16.msra.mxu0 %v4558_v49  ;;  %4279 = vmatpush3.bf16.msra.mxu1 %v4558_v49 }
 0x6c4   : > { %4150 = vmatprep.subr.bf16.mxu0 %v4559_v50  ;;  %4272 = vmatprep.subr.bf16.mxu1 %v4559_v50 }
 0x6c7   : > { %4151 = vmatpush3.bf16.msra.mxu0 %v4559_v50  ;;  %4280 = vmatpush3.bf16.msra.mxu1 %v4559_v50 }
 0x6c8   : > { %4152 = vmatprep.subr.bf16.mxu0 %v4560_v51  ;;  %4273 = vmatprep.subr.bf16.mxu1 %v4560_v51 }
 0x6cb   : > { %4153 = vmatpush3.bf16.msra.mxu0 %v4560_v51  ;;  %4281 = vmatpush3.bf16.msra.mxu1 %v4560_v51 }
 0x6ce   : > { %4155 = vmatmul.mubr.bf16.vlgmr.msra.gmra.mrb[0].mxu0 %v2853_v52  ;;  %4171 = vmatmul.mubr.bf16.vlgmr.msra.gmra.mrb[0].mxu1 %v2861_v53 }
 0x6cf   : > { %4158 = vmatprep.mubr.bf16.mxu0 %v2854_v54  ;;  %4174 = vmatprep.mubr.bf16.mxu1 %v2862_v55 }
 0x6d6   : > { %4159 = vmatmul.mubr.bf16.gmra.mrb[4].mxu0 %v2855_v56  ;;  %4175 = vmatmul.mubr.bf16.gmra.mrb[4].mxu1 %v2863_v57 }
 0x6d7   : > { %4162 = vmatprep.mubr.bf16.mxu0 %v2856_v58  ;;  %4178 = vmatprep.mubr.bf16.mxu1 %v2864_v59 }
 0x6de   : > { %4163 = vmatmul.mubr.bf16.gmra.mrb[8].mxu0 %v2857_v60  ;;  %4179 = vmatmul.mubr.bf16.gmra.mrb[8].mxu1 %v2865_v61 }
 0x6df   : > { %4166 = vmatprep.mubr.bf16.mxu0 %v2858_v62  ;;  %4182 = vmatprep.mubr.bf16.mxu1 %v2866_v63 }
 0x6e6   : > { %4167 = vmatmul.mubr.bf16.gmra.mrb[12].mxu0 %v2859_v0  ;;  %4183 = vmatmul.mubr.bf16.gmra.mrb[12].mxu1 %v2867_v1 }
 0x7a1   : > { %v4156_v3 = vpop.f32.mrb[0].mxu0  ;;  %v4172_v4 = vpop.f32.mrb[0].mxu1 }
 0x7a2   : > { %v2982_v5 = vadd.f32 %v4156_v3, %v5262_v2  ;;  %v3046_v6 = vadd.f32 %v4172_v4, %v5262_v2  ;;  %v2973_v7 = vpop.f32.mrb[1].mxu0  ;;  %v3037_v8 = vpop.f32.mrb[1].mxu1 }
 0x7a3   : > { %v2974_v9 = vadd.f32 %v5262_v2, %v2973_v7  ;;  %v3038_v24 = vadd.f32 %v5262_v2, %v3037_v8  ;;  %v4157_v10 = vpop.f32.mrb[2].mxu0  ;;  %v4173_v11 = vpop.f32.mrb[2].mxu1 }
 0x7a4   : > { %3102 = vst [vmem:[#allocation16 + $0x10] sm:$0xff] %v2982_v5  ;;  %3118 = vst [vmem:[#allocation16 + $0x90] sm:$0xff] %v3046_v6  ;;  %v2985_v12 = vadd.f32 %v4157_v10, %v5262_v2  ;;  %v3049_v13 = vadd.f32 %v4173_v11, %v5262_v2  ;;  %v2976_v14 = vpop.f32.mrb[3].mxu0  ;;  %v3040_v15 = vpop.f32.mrb[3].mxu1 }
 0x7a5   : > { %3100 = vst [vmem:[#allocation16] sm:$0xff] %v2974_v9  ;;  %3116 = vst [vmem:[#allocation16 + $0x80] sm:$0xff] %v3038_v24  ;;  %v2977_v16 = vadd.f32 %v5262_v2, %v2976_v14  ;;  %v3041_v17 = vadd.f32 %v5262_v2, %v3040_v15 }
 0x7a6   : > { %3103 = vst [vmem:[#allocation16 + $0x18] sm:$0xff] %v2985_v12  ;;  %3119 = vst [vmem:[#allocation16 + $0x98] sm:$0xff] %v3049_v13 }
 0x7a7   : > { %3101 = vst [vmem:[#allocation16 + $0x8] sm:$0xff] %v2977_v16  ;;  %3117 = vst [vmem:[#allocation16 + $0x88] sm:$0xff] %v3041_v17 }
 0x7a9   : > { %v4160_v18 = vpop.f32.mrb[4].mxu0  ;;  %v4176_v19 = vpop.f32.mrb[4].mxu1 }
 0x7aa   : > { %v2998_v20 = vadd.f32 %v4160_v18, %v5262_v2  ;;  %v3062_v21 = vadd.f32 %v4176_v19, %v5262_v2  ;;  %v2989_v22 = vpop.f32.mrb[5].mxu0  ;;  %v3053_v23 = vpop.f32.mrb[5].mxu1 }
 0x7ab   : > { %v2990_v25 = vadd.f32 %v5262_v2, %v2989_v22  ;;  %v3054_v26 = vadd.f32 %v5262_v2, %v3053_v23  ;;  %v4161_v27 = vpop.f32.mrb[6].mxu0  ;;  %v4177_v28 = vpop.f32.mrb[6].mxu1 }
 0x7ac   : > { %3106 = vst [vmem:[#allocation16 + $0x30] sm:$0xff] %v2998_v20  ;;  %3122 = vst [vmem:[#allocation16 + $0xb0] sm:$0xff] %v3062_v21  ;;  %v3001_v29 = vadd.f32 %v4161_v27, %v5262_v2  ;;  %v3065_v30 = vadd.f32 %v4177_v28, %v5262_v2  ;;  %v2992_v31 = vpop.f32.mrb[7].mxu0  ;;  %v3056_v32 = vpop.f32.mrb[7].mxu1 }
 0x7ad   : > { %3104 = vst [vmem:[#allocation16 + $0x20] sm:$0xff] %v2990_v25  ;;  %3120 = vst [vmem:[#allocation16 + $0xa0] sm:$0xff] %v3054_v26  ;;  %v2993_v33 = vadd.f32 %v5262_v2, %v2992_v31  ;;  %v3057_v34 = vadd.f32 %v5262_v2, %v3056_v32 }
 0x7ae   : > { %3107 = vst [vmem:[#allocation16 + $0x38] sm:$0xff] %v3001_v29  ;;  %3123 = vst [vmem:[#allocation16 + $0xb8] sm:$0xff] %v3065_v30 }
 0x7af   : > { %3105 = vst [vmem:[#allocation16 + $0x28] sm:$0xff] %v2993_v33  ;;  %3121 = vst [vmem:[#allocation16 + $0xa8] sm:$0xff] %v3057_v34 }
 0x7b1   : > { %v4164_v35 = vpop.f32.mrb[8].mxu0  ;;  %v4180_v36 = vpop.f32.mrb[8].mxu1 }
 0x7b2   : > { %v3014_v37 = vadd.f32 %v4164_v35, %v5262_v2  ;;  %v3078_v38 = vadd.f32 %v4180_v36, %v5262_v2  ;;  %v3005_v39 = vpop.f32.mrb[9].mxu0  ;;  %v3069_v40 = vpop.f32.mrb[9].mxu1 }
 0x7b3   : > { %v3006_v41 = vadd.f32 %v5262_v2, %v3005_v39  ;;  %v3070_v42 = vadd.f32 %v5262_v2, %v3069_v40  ;;  %v4165_v43 = vpop.f32.mrb[10].mxu0  ;;  %v4181_v44 = vpop.f32.mrb[10].mxu1 }
 0x7b4   : > { %3110 = vst [vmem:[#allocation16 + $0x50] sm:$0xff] %v3014_v37  ;;  %3126 = vst [vmem:[#allocation16 + $0xd0] sm:$0xff] %v3078_v38  ;;  %v3017_v45 = vadd.f32 %v4165_v43, %v5262_v2  ;;  %v3081_v46 = vadd.f32 %v4181_v44, %v5262_v2  ;;  %v3008_v47 = vpop.f32.mrb[11].mxu0  ;;  %v3072_v48 = vpop.f32.mrb[11].mxu1 }
 0x7b5   : > { %3108 = vst [vmem:[#allocation16 + $0x40] sm:$0xff] %v3006_v41  ;;  %3124 = vst [vmem:[#allocation16 + $0xc0] sm:$0xff] %v3070_v42  ;;  %v3009_v49 = vadd.f32 %v5262_v2, %v3008_v47  ;;  %v3073_v50 = vadd.f32 %v5262_v2, %v3072_v48 }
 0x7b6   : > { %3111 = vst [vmem:[#allocation16 + $0x58] sm:$0xff] %v3017_v45  ;;  %3127 = vst [vmem:[#allocation16 + $0xd8] sm:$0xff] %v3081_v46 }
 0x7b7   : > { %3109 = vst [vmem:[#allocation16 + $0x48] sm:$0xff] %v3009_v49  ;;  %3125 = vst [vmem:[#allocation16 + $0xc8] sm:$0xff] %v3073_v50 }
 0x7b9   : > { %v4168_v51 = vpop.f32.mrb[12].mxu0  ;;  %v4184_v52 = vpop.f32.mrb[12].mxu1 }
 0x7ba   : > { %v3030_v53 = vadd.f32 %v4168_v51, %v5262_v2  ;;  %v3094_v54 = vadd.f32 %v4184_v52, %v5262_v2  ;;  %v3021_v55 = vpop.f32.mrb[13].mxu0  ;;  %v3085_v56 = vpop.f32.mrb[13].mxu1 }
 0x7bb   : > { %v3022_v57 = vadd.f32 %v5262_v2, %v3021_v55  ;;  %v3086_v58 = vadd.f32 %v5262_v2, %v3085_v56  ;;  %v4169_v59 = vpop.f32.mrb[14].mxu0  ;;  %v4185_v60 = vpop.f32.mrb[14].mxu1 }
 0x7bc   : > { %3114 = vst [vmem:[#allocation16 + $0x70] sm:$0xff] %v3030_v53  ;;  %3130 = vst [vmem:[#allocation16 + $0xf0] sm:$0xff] %v3094_v54  ;;  %v3033_v61 = vadd.f32 %v4169_v59, %v5262_v2  ;;  %v3097_v62 = vadd.f32 %v4185_v60, %v5262_v2  ;;  %v3024_v63 = vpop.f32.mrb[15].mxu0  ;;  %v3088_v0 = vpop.f32.mrb[15].mxu1 }
 0x7bd   : > { %3112 = vst [vmem:[#allocation16 + $0x60] sm:$0xff] %v3022_v57  ;;  %3128 = vst [vmem:[#allocation16 + $0xe0] sm:$0xff] %v3086_v58  ;;  %v3025_v1 = vadd.f32 %v5262_v2, %v3024_v63  ;;  %v3089_v3 = vadd.f32 %v5262_v2, %v3088_v0 }
 0x7be   : > { %3115 = vst [vmem:[#allocation16 + $0x78] sm:$0xff] %v3033_v61  ;;  %3131 = vst [vmem:[#allocation16 + $0xf8] sm:$0xff] %v3097_v62 }
 0x7bf   : > { %3113 = vst [vmem:[#allocation16 + $0x68] sm:$0xff] %v3025_v1  ;;  %3129 = vst [vmem:[#allocation16 + $0xe8] sm:$0xff] %v3089_v3 }
 0x7c0 PF: > { %p4339_p3 = scmp.eq.s32.totalorder %s4914_s11, 5  ;;  %s4837_s18 = smov [#allocation16]  }
 0x7c1   : > { %s3148_s20 = sshll.u32 %s4837_s18, 4  ;;  %s3149_s20 = int_to_ptr.vmem [resolvable:$true] %s3148_s20 }
 0x7c2   : > { %s4733_s17 = scalar_lea.vmem %s3149_s20, 4096  ;;  %s4739_s26 = scalar_lea.vmem %s3149_s20, 8192 }
 0x7c3   : > { %p4734_p0 = scmp.ne.s32.totalorder %s3149_s20, %s4733_s17  ;;  %p4740_p13 = scmp.lt.s32.totalorder %s3149_s20, %s3149_s20 }
 0x7c4   : > { %p4741_p7 = scmp.lt.s32.totalorder %s4739_s26, %s4733_s17 }
 0x7c5   : > { %p4735_p12 = pnand %p4734_p0, %p4339_p3 }
 0x7c6   : > { %p4742_p6 = por %p4741_p7, %p4740_p13 }
 0x7c7   : > { %p4736_p5 = pneg %p4735_p12 }
 0x7c9   : > { %p4743_p4 = pnand %p4742_p6, %p4736_p5 }
 0x7cb   : > { %4746 = shalt.err (!%p4743_p4)
}
 0x7cc   : > { %s5405_s21 = sld [smem:[#allocation31_spill]] }
 0x7d2   : > { %s4747_s16 = scalar_lea.hbm %s5405_s21, 4096 }
 0x7d3   : > { %p4748_p2 = scmp.ne.s32.totalorder %s5405_s21, %s4747_s16  ;;  %p4753_p11 = scmp.lt.u32.totalorder %s4747_s16, %s5405_s21 }
 0x7d5   : > { %p4749_p8 = pnand %p4748_p2, %p4339_p3 }
 0x7d7   : > { %p4750_p10 = pneg %p4749_p8 }
 0x7d9   : > { %p4755_p9 = pnand %p4753_p11, %p4750_p10 }
 0x7db   : > { %4758 = shalt.err (!%p4755_p9)
}
 0x7dc   : > { %s4838_s27 = smov 128   ;;  %s4839_s8 = smov 8  }
 0x7dd   : > { %4303 = dma.vmem_to_hbm [thread:$0]  (%p4339_p3), %s3149_s20, 4096, %s5405_s21, [#allocation7], %s4838_s27, %s4838_s27, %s4839_s8  }
 0x7de PF: > { %p4340_p1 = scmp.ge.s32.totalorder %s4825_s10, 2  ;;  %s5406_s4 = sadd.s32 4294967294, %s4825_s10  }
 0x7df   : > { %p4341_p0 = scmp.eq.s32.totalorder %s5406_s4, 5 }
 0x7e1   : > { %p4327_p12 = pnand %p4341_p0, %p4340_p1 }
 0x7e3   : > { %4800 = dma.done.wait (!%p4327_p12), [#allocation7], 4096  }
 0x7e4   : > { %4802 = vsyncadd (!%p4327_p12), [#allocation7], 4294963200  ;;  %s29_s10 = sadd.s32 1, %s4825_s10   ;;  %s5407_s30 = sld [smem:[#allocation22_spill]] }
 0x7e5   : > { %p26_p5 = scmp.ge.s32.totalorder %s29_s10, 8   ;;  %s5408_s29 = sld [smem:[#allocation26_spill]] }
 0x7e6   : > { %s5409_s11 = sld [smem:[#allocation24_spill]]  ;;  %s5410_s9 = sld [smem:[#allocation25_spill]] }
 0x7e7   : > { %s5411_s27 = smov %s4809_s28  ;;  %28 = sbr.rel (!%p26_p5) target bundleno = 16 (0x10), region = 158 }
 0x7ea   : > { %s5412_s28 = smov %s5407_s30 }
 0x7ec   : > { %s5413_s30 = smov %s5409_s11 }
 0x7ee   :  { %3169 = vsyncpa [#allocation6], 1 }
 0x7ef   :  { %3171 = vsyncpa [#allocation6 + $0x1], 1 }
 0x7f0   :  { %3172 = vsyncpa [#allocation9], 1 }
 0x7f1   :  { %3173 = vsyncpa [#allocation12], 1 }
 0x7f2   :  { %3175 = vsyncpa [#allocation12 + $0x1], 1 }
 0x7f3   :  { %3176 = vsyncpa [#allocation15], 1 }
 0x7f4   :  { %3177 = vsyncpa [#allocation7], 1 }
 0x7f5   :  { %3179 = vsyncpa [#allocation7 + $0x1], 1 }

</bundles_post_ra>
